<compile_context>
chip_gen: v7x
topology: tpu7x:2x2x1
jax: 0.10.0
libtpu: 0.0.40
codegen_flags: <defaults>
</compile_context>

<pallas_src>
import jax
import jax.numpy as jnp
from jax.experimental import pallas as pl
from jax.experimental.pallas import tpu as pltpu

BN_EPS = 1e-5


def _round_up(x, m):
    return (x + m - 1) // m * m


# -----------------------------------------------------------------------------
# Kernel
# -----------------------------------------------------------------------------
def point2views_kernel(pf_ref, a_ref, e_ref, d_ref,
                       w1_ref, wa_ref, we_ref, wd_ref, b1_ref,
                       w2_ref, b2_ref,
                       out_ref):
    # Linear1 with BN1 (pre) and BN2 (post) already folded into w1/b1.
    # point_feat part on the MXU: bf16 x bf16 -> f32 accumulation.
    h = jnp.dot(pf_ref[...], w1_ref[...], preferred_element_type=jnp.float32)
    # a / e / d columns contribute rank-1 updates (avoids any activation concat).
    h = h + a_ref[...] * wa_ref[...]
    h = h + e_ref[...] * we_ref[...]
    h = h + d_ref[...] * wd_ref[...]
    h = h + b1_ref[...]
    # ReLU (Dropouts are identity in eval mode).
    h = jnp.maximum(h, 0.0)
    # Linear2 on the MXU, bf16 operands with f32 accumulation.
    out = jnp.dot(h.astype(w2_ref.dtype), w2_ref[...],
                  preferred_element_type=jnp.float32)
    out_ref[...] = (out + b2_ref[...]).astype(out_ref.dtype)


# -----------------------------------------------------------------------------
# Parameter folding (BN1 + Linear1 + BN2  ->  single affine)
# -----------------------------------------------------------------------------
def fold_params(p, in_features):
    """Fold BN1 into Linear1's rows and BN2 into its columns/bias. Returns f32."""
    s1 = p["bn1_gamma"] * jax.lax.rsqrt(p["bn1_var"] + BN_EPS)      # (1, K)
    t1 = p["bn1_beta"] - p["bn1_mean"] * s1                         # (1, K)
    s2 = p["bn2_gamma"] * jax.lax.rsqrt(p["bn2_var"] + BN_EPS)      # (1, F)
    t2 = p["bn2_beta"] - p["bn2_mean"] * s2                         # (1, F)

    w1_eff = (s1.T * p["w1"]) * s2                                  # (K, F)
    b1_eff = (t1 @ p["w1"] + p["b1"]) * s2 + t2                     # (1, F)

    f = in_features
    # Split rows in the original concat order: (point_feat, a, e, d).
    return dict(
        w1_pf=w1_eff[:f, :],          # (F, F)
        w_a=w1_eff[f:f + 1, :],       # (1, F)
        w_e=w1_eff[f + 1:f + 2, :],   # (1, F)
        w_d=w1_eff[f + 2:f + 3, :],   # (1, F)
        b1=b1_eff,                    # (1, F)
        w2=p["w2"],                   # (F, F)
        b2=p["b2"],                   # (1, F)
    )


# -----------------------------------------------------------------------------
# Wrapper
# -----------------------------------------------------------------------------
def point2views_forward(point_feat, a, e, d, params, *, tile_n=512):
    N, F = point_feat.shape
    assert params["w1"].shape[0] == F + 3, "kernel assumes dim == 3 (a, e, d columns)"

    folded = fold_params(params, F)

    # Tile size: multiple of 16 (bf16 sublane packing), capped for small N.
    tile_n = min(tile_n, _round_up(N, 16))
    tile_n = _round_up(tile_n, 16)
    n_pad = _round_up(N, tile_n)

    # bf16 activations / weights for the MXU + halved HBM traffic.
    # TODO(synk): in production the producer of point_feat would emit bf16 directly.
    pf = point_feat.astype(jnp.bfloat16)
    a32 = a.astype(jnp.float32)
    e32 = e.astype(jnp.float32)
    d32 = d.astype(jnp.float32)
    if n_pad != N:
        pad = ((0, n_pad - N), (0, 0))
        pf = jnp.pad(pf, pad)
        a32 = jnp.pad(a32, pad)
        e32 = jnp.pad(e32, pad)
        d32 = jnp.pad(d32, pad)

    w1_bf16 = folded["w1_pf"].astype(jnp.bfloat16)
    w2_bf16 = folded["w2"].astype(jnp.bfloat16)

    grid = (n_pad // tile_n,)

    in_specs = [
        pl.BlockSpec((tile_n, F), lambda i: (i, 0)),   # point_feat tile
        pl.BlockSpec((tile_n, 1), lambda i: (i, 0)),   # a tile
        pl.BlockSpec((tile_n, 1), lambda i: (i, 0)),   # e tile
        pl.BlockSpec((tile_n, 1), lambda i: (i, 0)),   # d tile
        pl.BlockSpec((F, F), lambda i: (0, 0)),        # folded W1 (point_feat rows)
        pl.BlockSpec((1, F), lambda i: (0, 0)),        # folded W1 row for a
        pl.BlockSpec((1, F), lambda i: (0, 0)),        # folded W1 row for e
        pl.BlockSpec((1, F), lambda i: (0, 0)),        # folded W1 row for d
        pl.BlockSpec((1, F), lambda i: (0, 0)),        # folded bias 1
        pl.BlockSpec((F, F), lambda i: (0, 0)),        # W2
        pl.BlockSpec((1, F), lambda i: (0, 0)),        # bias 2
    ]
    out_spec = pl.BlockSpec((tile_n, F), lambda i: (i, 0))

    cost = pl.CostEstimate(
        flops=int(4 * n_pad * F * F + 8 * n_pad * F),
        transcendentals=0,
        bytes_accessed=int(n_pad * F * 2          # point_feat (bf16)
                           + 3 * n_pad * 4        # a, e, d (f32)
                           + 2 * F * F * 2        # W1', W2 (bf16)
                           + 5 * F * 4            # rank-1 rows + biases (f32)
                           + n_pad * F * 4),      # output (f32)
    )

    out = pl.pallas_call(
        point2views_kernel,
        out_shape=jax.ShapeDtypeStruct((n_pad, F), jnp.float32),
        grid_spec=pltpu.PrefetchScalarGridSpec(
            num_scalar_prefetch=0,
            grid=grid,
            in_specs=in_specs,
            out_specs=out_spec,
        ),
        compiler_params=pltpu.CompilerParams(
            dimension_semantics=("parallel",)),
        cost_estimate=cost,
    )(pf, a32, e32, d32,
      w1_bf16, folded["w_a"], folded["w_e"], folded["w_d"], folded["b1"],
      w2_bf16, folded["b2"])

    return out[:N] if n_pad != N else out


# -----------------------------------------------------------------------------
# Parameters & references
# -----------------------------------------------------------------------------
def init_params(key, in_features, dim):
    """Deterministic synthetic parameters (same shapes as the PyTorch module)."""
    f_in = in_features + dim
    keys = jax.random.split(key, 10)
    p = {}
    # BatchNorm1d(in_features + dim)
    p["bn1_gamma"] = (1.0 + 0.1 * jax.random.normal(keys[0], (1, f_in))).astype(jnp.float32)
    p["bn1_beta"]  = (0.05 * jax.random.normal(keys[1], (1, f_in))).astype(jnp.float32)
    p["bn1_mean"]  = (0.1 * jax.random.normal(keys[2], (1, f_in))).astype(jnp.float32)
    p["bn1_var"]   = (jnp.abs(jax.random.normal(keys[3], (1, f_in))) + 0.5).astype(jnp.float32)
    # Linear(f_in -> in_features); stored transposed as (f_in, in_features)
    p["w1"] = (jax.random.normal(keys[4], (f_in, in_features)) / jnp.sqrt(f_in)).astype(jnp.float32)
    p["b1"] = (0.01 * jax.random.normal(keys[5], (1, in_features))).astype(jnp.float32)
    # BatchNorm1d(in_features)
    p["bn2_gamma"] = (1.0 + 0.1 * jax.random.normal(keys[6], (1, in_features))).astype(jnp.float32)
    p["bn2_beta"]  = (0.05 * jax.random.normal(keys[7], (1, in_features))).astype(jnp.float32)
    p["bn2_mean"]  = (0.1 * jax.random.normal(keys[8], (1, in_features))).astype(jnp.float32)
    p["bn2_var"]   = (jnp.abs(jax.random.normal(keys[9], (1, in_features))) + 0.5).astype(jnp.float32)
    # Linear(in_features -> in_features); stored transposed as (in, out)
    k2 = jax.random.split(keys[0], 2)
    p["w2"] = (jax.random.normal(k2[0], (in_features, in_features))
               / jnp.sqrt(in_features)).astype(jnp.float32)
    p["b2"] = (0.01 * jax.random.normal(k2[1], (1, in_features))).astype(jnp.float32)
    return p


_HI = jax.lax.Precision.HIGHEST


def reference_forward(point_feat, a, e, d, p):
    """Exact eval-mode PyTorch semantics, f32."""
    x = jnp.concatenate((point_feat, a, e, d), axis=1)
    x = (x - p["bn1_mean"]) * jax.lax.rsqrt(p["bn1_var"] + BN_EPS) * p["bn1_gamma"] + p["bn1_beta"]
    h = jnp.dot(x, p["w1"], precision=_HI) + p["b1"]
    h = (h - p["bn2_mean"]) * jax.lax.rsqrt(p["bn2_var"] + BN_EPS) * p["bn2_gamma"] + p["bn2_beta"]
    h = jnp.maximum(h, 0.0)
    return jnp.dot(h, p["w2"], precision=_HI) + p["b2"]


def reference_folded(point_feat, a, e, d, folded, *, emulate_bf16):
    """Folded-parameter reference; optionally emulates the kernel's bf16 casts."""
    pf, w1, w2 = point_feat, folded["w1_pf"], folded["w2"]
    if emulate_bf16:
        pf = pf.astype(jnp.bfloat16).astype(jnp.float32)
        w1 = w1.astype(jnp.bfloat16).astype(jnp.float32)
        w2 = w2.astype(jnp.bfloat16).astype(jnp.float32)
    h = jnp.dot(pf, w1, precision=_HI)
    h = h + a * folded["w_a"] + e * folded["w_e"] + d * folded["w_d"] + folded["b1"]
    h = jnp.maximum(h, 0.0)
    if emulate_bf16:
        h = h.astype(jnp.bfloat16).astype(jnp.float32)
    return jnp.dot(h, w2, precision=_HI) + folded["b2"]


# -----------------------------------------------------------------------------
# Demo / self-check
# -----------------------------------------------------------------------------
if __name__ == "__main__":
    in_features = 32   # point feature width
    dim = 3            # a, e, d each contribute 1 column
    N = 1024           # batch of points (2 grid steps at TILE_N = 512)

    key = jax.random.PRNGKey(0)
    k_pf, k_a, k_e, k_d, k_par = jax.random.split(key, 5)

    point_feat = jax.random.normal(k_pf, (N, in_features), dtype=jnp.float32)
    a = jax.random.normal(k_a, (N, 1), dtype=jnp.float32)
    e = jax.random.normal(k_e, (N, 1), dtype=jnp.float32)
    d = jax.random.normal(k_d, (N, 1), dtype=jnp.float32)

    params = init_params(k_par, in_features, dim)

    out = point2views_forward(point_feat, a, e, d, params)
    out = jax.block_until_ready(out)
    assert out.shape == (N, in_features)

    folded = fold_params(params, in_features)

    # (1) BN-folding algebra matches the exact eval-mode math (pure f32).
    ref_exact = reference_forward(point_feat, a, e, d, params)
    ref_fold_f32 = reference_folded(point_feat, a, e, d, folded, emulate_bf16=False)
    assert jnp.allclose(ref_fold_f32, ref_exact, atol=1e-3, rtol=1e-3), \
        "BN folding mismatch vs exact reference"

    # (2) Kernel matches a reference that uses identical folding + bf16 casts.
    ref_matched = reference_folded(point_feat, a, e, d, folded, emulate_bf16=True)
    assert jnp.allclose(out, ref_matched, atol=3e-3, rtol=3e-3), \
        "kernel mismatch vs matched (bf16) reference"

    print("KERNEL_OK")
</pallas_src>

<mosaic_0001>
module attributes {stable_mosaic.version = 11 : i64} {
  func.func @point2views_kernel(%arg0: i32, %arg1: memref<512x32xbf16, #tpu.memory_space<vmem>>, %arg2: memref<512x1xf32, #tpu.memory_space<vmem>>, %arg3: memref<512x1xf32, #tpu.memory_space<vmem>>, %arg4: memref<512x1xf32, #tpu.memory_space<vmem>>, %arg5: memref<32x32xbf16, #tpu.memory_space<vmem>>, %arg6: memref<1x32xf32, #tpu.memory_space<vmem>>, %arg7: memref<1x32xf32, #tpu.memory_space<vmem>>, %arg8: memref<1x32xf32, #tpu.memory_space<vmem>>, %arg9: memref<1x32xf32, #tpu.memory_space<vmem>>, %arg10: memref<32x32xbf16, #tpu.memory_space<vmem>>, %arg11: memref<1x32xf32, #tpu.memory_space<vmem>>, %arg12: memref<512x32xf32, #tpu.memory_space<vmem>>) attributes {dimension_semantics = [#tpu.dimension_semantics<parallel>], iteration_bounds = array<i64: 2>, scalar_prefetch = 0 : i64, scratch_operands = 0 : i64, tpu.core_type = #tpu.core_type<tc>, window_params = [{transform_indices = @transform_0, window_bounds = array<i64: 512, 32>}, {transform_indices = @transform_1, window_bounds = array<i64: 512, 1>}, {transform_indices = @transform_2, window_bounds = array<i64: 512, 1>}, {transform_indices = @transform_3, window_bounds = array<i64: 512, 1>}, {pipeline_mode = #tpu.pipeline_mode<synchronous>, transform_indices = @transform_4, window_bounds = array<i64: 32, 32>}, {pipeline_mode = #tpu.pipeline_mode<synchronous>, transform_indices = @transform_5, window_bounds = array<i64: 1, 32>}, {pipeline_mode = #tpu.pipeline_mode<synchronous>, transform_indices = @transform_6, window_bounds = array<i64: 1, 32>}, {pipeline_mode = #tpu.pipeline_mode<synchronous>, transform_indices = @transform_7, window_bounds = array<i64: 1, 32>}, {pipeline_mode = #tpu.pipeline_mode<synchronous>, transform_indices = @transform_8, window_bounds = array<i64: 1, 32>}, {pipeline_mode = #tpu.pipeline_mode<synchronous>, transform_indices = @transform_9, window_bounds = array<i64: 32, 32>}, {pipeline_mode = #tpu.pipeline_mode<synchronous>, transform_indices = @transform_10, window_bounds = array<i64: 1, 32>}, {transform_indices = @transform_11, window_bounds = array<i64: 512, 32>}]} {
    %c0 = arith.constant 0 : index
    %c0_0 = arith.constant 0 : index
    %0 = vector.load %arg1[%c0, %c0_0] : memref<512x32xbf16, #tpu.memory_space<vmem>>, vector<512x32xbf16>
    %c0_1 = arith.constant 0 : index
    %c0_2 = arith.constant 0 : index
    %1 = vector.load %arg5[%c0_1, %c0_2] : memref<32x32xbf16, #tpu.memory_space<vmem>>, vector<32x32xbf16>
    %cst = arith.constant dense<0.000000e+00> : vector<512x32xf32>
    %2 = tpu.matmul %0, %1, %cst {dimension_numbers = #tpu.dot_dimension_numbers<[1], [0], [0], [1], [0, 0, 1, 1], [], []>} : vector<512x32xbf16>, vector<32x32xbf16>, vector<512x32xf32> -> vector<512x32xf32>
    %c0_3 = arith.constant 0 : index
    %c0_4 = arith.constant 0 : index
    %3 = vector.load %arg2[%c0_3, %c0_4] : memref<512x1xf32, #tpu.memory_space<vmem>>, vector<512x1xf32>
    %c0_5 = arith.constant 0 : index
    %c0_6 = arith.constant 0 : index
    %4 = vector.load %arg6[%c0_5, %c0_6] : memref<1x32xf32, #tpu.memory_space<vmem>>, vector<1x32xf32>
    %5 = vector.broadcast %3 : vector<512x1xf32> to vector<512x32xf32>
    %6 = vector.broadcast %4 : vector<1x32xf32> to vector<512x32xf32>
    %7 = arith.mulf %5, %6 : vector<512x32xf32>
    %8 = arith.addf %2, %7 : vector<512x32xf32>
    %c0_7 = arith.constant 0 : index
    %c0_8 = arith.constant 0 : index
    %9 = vector.load %arg3[%c0_7, %c0_8] : memref<512x1xf32, #tpu.memory_space<vmem>>, vector<512x1xf32>
    %c0_9 = arith.constant 0 : index
    %c0_10 = arith.constant 0 : index
    %10 = vector.load %arg7[%c0_9, %c0_10] : memref<1x32xf32, #tpu.memory_space<vmem>>, vector<1x32xf32>
    %11 = vector.broadcast %9 : vector<512x1xf32> to vector<512x32xf32>
    %12 = vector.broadcast %10 : vector<1x32xf32> to vector<512x32xf32>
    %13 = arith.mulf %11, %12 : vector<512x32xf32>
    %14 = arith.addf %8, %13 : vector<512x32xf32>
    %c0_11 = arith.constant 0 : index
    %c0_12 = arith.constant 0 : index
    %15 = vector.load %arg4[%c0_11, %c0_12] : memref<512x1xf32, #tpu.memory_space<vmem>>, vector<512x1xf32>
    %c0_13 = arith.constant 0 : index
    %c0_14 = arith.constant 0 : index
    %16 = vector.load %arg8[%c0_13, %c0_14] : memref<1x32xf32, #tpu.memory_space<vmem>>, vector<1x32xf32>
    %17 = vector.broadcast %15 : vector<512x1xf32> to vector<512x32xf32>
    %18 = vector.broadcast %16 : vector<1x32xf32> to vector<512x32xf32>
    %19 = arith.mulf %17, %18 : vector<512x32xf32>
    %20 = arith.addf %14, %19 : vector<512x32xf32>
    %c0_15 = arith.constant 0 : index
    %c0_16 = arith.constant 0 : index
    %21 = vector.load %arg9[%c0_15, %c0_16] : memref<1x32xf32, #tpu.memory_space<vmem>>, vector<1x32xf32>
    %22 = vector.broadcast %21 : vector<1x32xf32> to vector<512x32xf32>
    %23 = arith.addf %20, %22 : vector<512x32xf32>
    %cst_17 = arith.constant 0.000000e+00 : f32
    %24 = vector.broadcast %cst_17 : f32 to vector<512x32xf32>
    %25 = arith.maximumf %23, %24 : vector<512x32xf32>
    %26 = arith.truncf %25 : vector<512x32xf32> to vector<512x32xbf16>
    %c0_18 = arith.constant 0 : index
    %c0_19 = arith.constant 0 : index
    %27 = vector.load %arg10[%c0_18, %c0_19] : memref<32x32xbf16, #tpu.memory_space<vmem>>, vector<32x32xbf16>
    %cst_20 = arith.constant dense<0.000000e+00> : vector<512x32xf32>
    %28 = tpu.matmul %26, %27, %cst_20 {dimension_numbers = #tpu.dot_dimension_numbers<[1], [0], [0], [1], [0, 0, 1, 1], [], []>} : vector<512x32xbf16>, vector<32x32xbf16>, vector<512x32xf32> -> vector<512x32xf32>
    %c0_21 = arith.constant 0 : index
    %c0_22 = arith.constant 0 : index
    %29 = vector.load %arg11[%c0_21, %c0_22] : memref<1x32xf32, #tpu.memory_space<vmem>>, vector<1x32xf32>
    %30 = vector.broadcast %29 : vector<1x32xf32> to vector<512x32xf32>
    %31 = arith.addf %28, %30 : vector<512x32xf32>
    %c0_23 = arith.constant 0 : index
    %c0_24 = arith.constant 0 : index
    %32 = vector.load %arg12[%c0_23, %c0_24] : memref<512x32xf32, #tpu.memory_space<vmem>>, vector<512x32xf32>
    tpu.vector_store %arg12[%c0_23, %c0_24], %31 {strides = array<i32>} : memref<512x32xf32, #tpu.memory_space<vmem>>, vector<512x32xf32>,
    return
  }
  func.func @transform_0(%arg0: i32) -> (i32, i32) {
    %c0_i32 = arith.constant 0 : i32
    %c0_i32_0 = arith.constant 0 : i32
    return %arg0, %c0_i32 : i32, i32
  }
  func.func @transform_1(%arg0: i32) -> (i32, i32) {
    %c0_i32 = arith.constant 0 : i32
    %c0_i32_0 = arith.constant 0 : i32
    return %arg0, %c0_i32 : i32, i32
  }
  func.func @transform_2(%arg0: i32) -> (i32, i32) {
    %c0_i32 = arith.constant 0 : i32
    %c0_i32_0 = arith.constant 0 : i32
    return %arg0, %c0_i32 : i32, i32
  }
  func.func @transform_3(%arg0: i32) -> (i32, i32) {
    %c0_i32 = arith.constant 0 : i32
    %c0_i32_0 = arith.constant 0 : i32
    return %arg0, %c0_i32 : i32, i32
  }
  func.func @transform_4(%arg0: i32) -> (i32, i32) {
    %c0_i32 = arith.constant 0 : i32
    %c0_i32_0 = arith.constant 0 : i32
    %c0_i32_1 = arith.constant 0 : i32
    return %c0_i32, %c0_i32_0 : i32, i32
  }
  func.func @transform_5(%arg0: i32) -> (i32, i32) {
    %c0_i32 = arith.constant 0 : i32
    %c0_i32_0 = arith.constant 0 : i32
    %c0_i32_1 = arith.constant 0 : i32
    return %c0_i32, %c0_i32_0 : i32, i32
  }
  func.func @transform_6(%arg0: i32) -> (i32, i32) {
    %c0_i32 = arith.constant 0 : i32
    %c0_i32_0 = arith.constant 0 : i32
    %c0_i32_1 = arith.constant 0 : i32
    return %c0_i32, %c0_i32_0 : i32, i32
  }
  func.func @transform_7(%arg0: i32) -> (i32, i32) {
    %c0_i32 = arith.constant 0 : i32
    %c0_i32_0 = arith.constant 0 : i32
    %c0_i32_1 = arith.constant 0 : i32
    return %c0_i32, %c0_i32_0 : i32, i32
  }
  func.func @transform_8(%arg0: i32) -> (i32, i32) {
    %c0_i32 = arith.constant 0 : i32
    %c0_i32_0 = arith.constant 0 : i32
    %c0_i32_1 = arith.constant 0 : i32
    return %c0_i32, %c0_i32_0 : i32, i32
  }
  func.func @transform_9(%arg0: i32) -> (i32, i32) {
    %c0_i32 = arith.constant 0 : i32
    %c0_i32_0 = arith.constant 0 : i32
    %c0_i32_1 = arith.constant 0 : i32
    return %c0_i32, %c0_i32_0 : i32, i32
  }
  func.func @transform_10(%arg0: i32) -> (i32, i32) {
    %c0_i32 = arith.constant 0 : i32
    %c0_i32_0 = arith.constant 0 : i32
    %c0_i32_1 = arith.constant 0 : i32
    return %c0_i32, %c0_i32_0 : i32, i32
  }
  func.func @transform_11(%arg0: i32) -> (i32, i32) {
    %c0_i32 = arith.constant 0 : i32
    %c0_i32_0 = arith.constant 0 : i32
    return %arg0, %c0_i32 : i32, i32
  }
}

</mosaic_0001>

<bundles_post_ra>
// kernel: tpu_custom_call.1
= control target key start
LH: loop header
LB: loop body
LE: loop exit
PB: predicated region body
PF: predicated region fallthrough
CT: control target
= control target key end

     0   :  { %s3753_s17 = smov 0   ;;  %s5080_s0 = inlined_call_operand.vmem [shape: bf16[1024,32], index: 0, kind: input, shape index: {}]   ;;  %s5081_s1 = inlined_call_operand.vmem [shape: f32[1024,1], index: 1, kind: input, shape index: {}]   ;;  %s5082_s2 = inlined_call_operand.vmem [shape: f32[1024,1], index: 2, kind: input, shape index: {}]   ;;  %s5083_s3 = inlined_call_operand.vmem [shape: f32[1024,1], index: 3, kind: input, shape index: {}]   ;;  %s5084_s4 = inlined_call_operand.vmem [shape: bf16[32,32], index: 4, kind: input, shape index: {}]   ;;  %s5085_s5 = inlined_call_operand.vmem [shape: f32[1,32], index: 5, kind: input, shape index: {}]   ;;  %s5086_s6 = inlined_call_operand.vmem [shape: f32[1,32], index: 6, kind: input, shape index: {}]   ;;  %s5087_s7 = inlined_call_operand.vmem [shape: f32[1,32], index: 7, kind: input, shape index: {}]   ;;  %s5088_s8 = inlined_call_operand.vmem [shape: f32[1,32], index: 8, kind: input, shape index: {}]   ;;  %s5089_s9 = inlined_call_operand.vmem [shape: bf16[32,32], index: 9, kind: input, shape index: {}]   ;;  %s5090_s10 = inlined_call_operand.vmem [shape: f32[1,32], index: 10, kind: input, shape index: {}]   ;;  %s5091_s11 = inlined_call_operand.vmem [shape: f32[1024,32], index: 11, kind: output, shape index: {}]  }
   0x1 LB: > { %s3307_s18 = sadd.s32 4294967295, %s3690_s17   ;;  %p3311_p0 = scmp.ge.s32.totalorder %s3690_s17, 1  ;;  %s3690_s17 = sphi %s3753_s17, %s21_s17  }
   0x2   : > { %p371_p1 = scmp.lt.s32.totalorder %s3690_s17, 3 }
   0x4   : > { %p372_p2 = pnand %p3311_p0, %p371_p1 }
   0x6   : > { %375 = sbr.rel (%p372_p2) target bundleno = 757 (0x2f5), region = 64 }
   0xd   : > { %v3644_v0 = vld [vmem:[%s5084_s4] sm:$0xff]   ;;  %v3692_v1 = vmov 0   ;;  %v3645_v2 = vld [vmem:[%s5084_s4 + $0x8] sm:$0xff]   ;;  %s3312_s23 = sshll.u32 %s3307_s18, 6  ;;  %vm1152_vm0 = vcmask 261120  }
   0xe   : > { %3643 = vset.pattern.permute.xlu1 %v3692_v1  ;;  %3642 = vset.pattern.permute.xlu0 %v3692_v1  ;;  %p427_p3 = scmp.lt.s32.totalorder %s3312_s23, 127 }
   0xf   : > { %3497 = vmatprep.subr.bf16.mxu0 %v3644_v0 }
  0x10   : > { %3498 = vmatpush3.bf16.msra.mxu0 %v3644_v0  ;;  %s5265_s23 = smov (!%p427_p3, %s3312_s23), 127 }
  0x11   : > { %3499 = vmatprep.subr.bf16.mxu0 %v3645_v2  ;;  %s3767_s24 = sshll.u32 %s5265_s23, 3  ;;  %s3313_s25 = sshll.u32 %s5265_s23, 2 }
  0x12   : > { %s3773_s28 = scalar_lea.vmem %s5081_s1, %s3767_s24  ;;  %s3778_s12 = scalar_lea.vmem %s5080_s0, %s3313_s25 }
  0x13   : > { %v527_v3 = vld [vmem:[%s3773_s28 + $0x10] sm:$0xff]  ;;  %v525_v4 = vld [vmem:[%s3773_s28] sm:$0xff]  ;;  %v3647_v6 = vld [vmem:[%s3778_s12 + $0x8] sm:$0xff]   ;;  %s3911_s15 = scalar_lea.vmem %s5082_s2, %s3767_s24  ;;  %s3986_s19 = scalar_lea.vmem %s5083_s3, %s3767_s24 }
  0x14   : > { %3500 = vmatpush3.bf16.msra.mxu0 %v3645_v2  ;;  %602 = vperm.xlu1 %3643, %v527_v3   ;;  %v3646_v5 = vld [vmem:[%s3778_s12] sm:$0xff]   ;;  %v528_v7 = vld [vmem:[%s3773_s28 + $0x18] sm:$0xff]  ;;  %v526_v8 = vld [vmem:[%s3773_s28 + $0x8] sm:$0xff] }
  0x15   : > { %592 = vperm.xlu0 %3642, %v525_v4   ;;  %3501 = vmatprep.mubr.msk.bf16.mxu0 %vm1152_vm0, %v3646_v5  ;;  %v3648_v9 = vld [vmem:[%s3778_s12 + $0x10] sm:$0xff]   ;;  %v530_v10 = vld [vmem:[%s3773_s28 + $0x28] sm:$0xff]  ;;  %v529_v11 = vld [vmem:[%s3773_s28 + $0x20] sm:$0xff] }
  0x16   : > { %v3649_v12 = vld [vmem:[%s3778_s12 + $0x18] sm:$0xff]   ;;  %v531_v14 = vld [vmem:[%s3773_s28 + $0x30] sm:$0xff]  ;;  %v3650_v15 = vld [vmem:[%s3778_s12 + $0x20] sm:$0xff]  }
  0x17   : > { %3502 = vmatmul.mubr.msk.bf16.vlgmr.msra.gmra.mrb[0].mxu0 %vm1152_vm0, %v3647_v6  ;;  %v532_v13 = vld [vmem:[%s3773_s28 + $0x38] sm:$0xff]  ;;  %v534_v16 = vld [vmem:[%s3773_s28 + $0x48] sm:$0xff]  ;;  %v533_v17 = vld [vmem:[%s3773_s28 + $0x40] sm:$0xff] }
  0x18   : > { %607 = vperm.xlu1 %3643, %v528_v7   ;;  %3505 = vmatprep.mubr.msk.bf16.mxu0 %vm1152_vm0, %v3648_v9  ;;  %v3651_v18 = vld [vmem:[%s3778_s12 + $0x28] sm:$0xff]   ;;  %v536_v19 = vld [vmem:[%s3773_s28 + $0x58] sm:$0xff]  ;;  %v535_v20 = vld [vmem:[%s3773_s28 + $0x50] sm:$0xff] }
  0x19   : > { %597 = vperm.xlu0 %3642, %v526_v8   ;;  %v3652_v21 = vld [vmem:[%s3778_s12 + $0x30] sm:$0xff]   ;;  %v538_v22 = vld [vmem:[%s3773_s28 + $0x68] sm:$0xff]  ;;  %v537_v23 = vld [vmem:[%s3773_s28 + $0x60] sm:$0xff] }
  0x1a   : > { %v3653_v24 = vld [vmem:[%s3778_s12 + $0x38] sm:$0xff]   ;;  %v539_v26 = vld [vmem:[%s3773_s28 + $0x70] sm:$0xff]  ;;  %v3654_v27 = vld [vmem:[%s3778_s12 + $0x40] sm:$0xff]  }
  0x1b   : > { %v540_v25 = vld [vmem:[%s3773_s28 + $0x78] sm:$0xff]  ;;  %v542_v28 = vld [vmem:[%s3773_s28 + $0x88] sm:$0xff]  ;;  %v541_v29 = vld [vmem:[%s3773_s28 + $0x80] sm:$0xff] }
  0x1c   : > { %617 = vperm.xlu1 %3643, %v530_v10   ;;  %v3655_v30 = vld [vmem:[%s3778_s12 + $0x48] sm:$0xff]   ;;  %v544_v31 = vld [vmem:[%s3773_s28 + $0x98] sm:$0xff]  ;;  %v543_v32 = vld [vmem:[%s3773_s28 + $0x90] sm:$0xff] }
  0x1d   : > { %612 = vperm.xlu0 %3642, %v529_v11   ;;  %v3656_v33 = vld [vmem:[%s3778_s12 + $0x50] sm:$0xff]   ;;  %v546_v34 = vld [vmem:[%s3773_s28 + $0xa8] sm:$0xff]  ;;  %v545_v35 = vld [vmem:[%s3773_s28 + $0xa0] sm:$0xff] }
  0x1e   : > { %v3657_v36 = vld [vmem:[%s3778_s12 + $0x58] sm:$0xff]   ;;  %v547_v38 = vld [vmem:[%s3773_s28 + $0xb0] sm:$0xff]  ;;  %v3658_v39 = vld [vmem:[%s3778_s12 + $0x60] sm:$0xff]  }
  0x1f   : > { %3506 = vmatmul.mubr.msk.bf16.gmra.mrb[4].mxu0 %vm1152_vm0, %v3649_v12  ;;  %v548_v37 = vld [vmem:[%s3773_s28 + $0xb8] sm:$0xff]  ;;  %v550_v40 = vld [vmem:[%s3773_s28 + $0xc8] sm:$0xff]  ;;  %v549_v41 = vld [vmem:[%s3773_s28 + $0xc0] sm:$0xff] }
  0x20   : > { %627 = vperm.xlu1 %3643, %v532_v13   ;;  %3509 = vmatprep.mubr.msk.bf16.mxu0 %vm1152_vm0, %v3650_v15  ;;  %v3659_v42 = vld [vmem:[%s3778_s12 + $0x68] sm:$0xff]   ;;  %v552_v43 = vld [vmem:[%s3773_s28 + $0xd8] sm:$0xff]  ;;  %v551_v44 = vld [vmem:[%s3773_s28 + $0xd0] sm:$0xff] }
  0x21   : > { %622 = vperm.xlu0 %3642, %v531_v14   ;;  %v3660_v45 = vld [vmem:[%s3778_s12 + $0x70] sm:$0xff]   ;;  %v554_v46 = vld [vmem:[%s3773_s28 + $0xe8] sm:$0xff]  ;;  %v553_v47 = vld [vmem:[%s3773_s28 + $0xe0] sm:$0xff] }
  0x22   : > { %v3661_v48 = vld [vmem:[%s3778_s12 + $0x78] sm:$0xff]   ;;  %v555_v50 = vld [vmem:[%s3773_s28 + $0xf0] sm:$0xff]  ;;  %v3662_v51 = vld [vmem:[%s3778_s12 + $0x80] sm:$0xff]  }
  0x23   : > { %v556_v49 = vld [vmem:[%s3773_s28 + $0xf8] sm:$0xff]  ;;  %v558_v52 = vld [vmem:[%s3773_s28 + $0x108] sm:$0xff]  ;;  %v557_v53 = vld [vmem:[%s3773_s28 + $0x100] sm:$0xff] }
  0x24   : > { %637 = vperm.xlu1 %3643, %v534_v16   ;;  %v3663_v54 = vld [vmem:[%s3778_s12 + $0x88] sm:$0xff]   ;;  %v560_v55 = vld [vmem:[%s3773_s28 + $0x118] sm:$0xff]  ;;  %v559_v56 = vld [vmem:[%s3773_s28 + $0x110] sm:$0xff] }
  0x25   : > { %632 = vperm.xlu0 %3642, %v533_v17   ;;  %v3664_v57 = vld [vmem:[%s3778_s12 + $0x90] sm:$0xff]   ;;  %v562_v58 = vld [vmem:[%s3773_s28 + $0x128] sm:$0xff]  ;;  %v561_v59 = vld [vmem:[%s3773_s28 + $0x120] sm:$0xff] }
  0x26   : > { %v3665_v60 = vld [vmem:[%s3778_s12 + $0x98] sm:$0xff]   ;;  %v563_v62 = vld [vmem:[%s3773_s28 + $0x130] sm:$0xff]  ;;  %v3666_v63 = vld [vmem:[%s3778_s12 + $0xa0] sm:$0xff]  }
  0x27   : > { %3510 = vmatmul.mubr.msk.bf16.gmra.mrb[8].mxu0 %vm1152_vm0, %v3651_v18  ;;  %v564_v61 = vld [vmem:[%s3773_s28 + $0x138] sm:$0xff]  ;;  %v566_v0 = vld [vmem:[%s3773_s28 + $0x148] sm:$0xff]  ;;  %v565_v1 = vld [vmem:[%s3773_s28 + $0x140] sm:$0xff] }
  0x28   : > { %647 = vperm.xlu1 %3643, %v536_v19   ;;  %3513 = vmatprep.mubr.msk.bf16.mxu0 %vm1152_vm0, %v3652_v21  ;;  %v3667_v2 = vld [vmem:[%s3778_s12 + $0xa8] sm:$0xff]   ;;  %v568_v3 = vld [vmem:[%s3773_s28 + $0x158] sm:$0xff]  ;;  %v567_v4 = vld [vmem:[%s3773_s28 + $0x150] sm:$0xff] }
  0x29   : > { %642 = vperm.xlu0 %3642, %v535_v20   ;;  %v3668_v5 = vld [vmem:[%s3778_s12 + $0xb0] sm:$0xff]   ;;  %v570_v6 = vld [vmem:[%s3773_s28 + $0x168] sm:$0xff]  ;;  %v569_v7 = vld [vmem:[%s3773_s28 + $0x160] sm:$0xff] }
  0x2a   : > { %v3669_v8 = vld [vmem:[%s3778_s12 + $0xb8] sm:$0xff]   ;;  %v571_v10 = vld [vmem:[%s3773_s28 + $0x170] sm:$0xff]  ;;  %v3670_v11 = vld [vmem:[%s3778_s12 + $0xc0] sm:$0xff]  }
  0x2b   : > { %v572_v9 = vld [vmem:[%s3773_s28 + $0x178] sm:$0xff]  ;;  %v574_v12 = vld [vmem:[%s3773_s28 + $0x188] sm:$0xff]  ;;  %v573_v13 = vld [vmem:[%s3773_s28 + $0x180] sm:$0xff] }
  0x2c   : > { %657 = vperm.xlu1 %3643, %v538_v22   ;;  %v3671_v14 = vld [vmem:[%s3778_s12 + $0xc8] sm:$0xff]   ;;  %v576_v15 = vld [vmem:[%s3773_s28 + $0x198] sm:$0xff]  ;;  %v575_v16 = vld [vmem:[%s3773_s28 + $0x190] sm:$0xff] }
  0x2d   : > { %652 = vperm.xlu0 %3642, %v537_v23   ;;  %v3672_v17 = vld [vmem:[%s3778_s12 + $0xd0] sm:$0xff]   ;;  %v578_v18 = vld [vmem:[%s3773_s28 + $0x1a8] sm:$0xff]  ;;  %v577_v19 = vld [vmem:[%s3773_s28 + $0x1a0] sm:$0xff] }
  0x2e   : > { %v3673_v20 = vld [vmem:[%s3778_s12 + $0xd8] sm:$0xff]   ;;  %v579_v22 = vld [vmem:[%s3773_s28 + $0x1b0] sm:$0xff]  ;;  %v3674_v23 = vld [vmem:[%s3778_s12 + $0xe0] sm:$0xff]  }
  0x2f   : > { %3514 = vmatmul.mubr.msk.bf16.gmra.mrb[12].mxu0 %vm1152_vm0, %v3653_v24  ;;  %v580_v21 = vld [vmem:[%s3773_s28 + $0x1b8] sm:$0xff]  ;;  %v582_v24 = vld [vmem:[%s3773_s28 + $0x1c8] sm:$0xff] }
  0x30   : > { %667 = vperm.xlu1 %3643, %v540_v25   ;;  %3517 = vmatprep.mubr.msk.bf16.mxu0 %vm1152_vm0, %v3654_v27  ;;  %v581_v25 = vld [vmem:[%s3773_s28 + $0x1c0] sm:$0xff]  ;;  %v584_v27 = vld [vmem:[%s3773_s28 + $0x1d8] sm:$0xff] }
  0x31   : > { %662 = vperm.xlu0 %3642, %v539_v26   ;;  %v3675_v26 = vld [vmem:[%s3778_s12 + $0xe8] sm:$0xff]  }
  0x34   : > { %677 = vperm.xlu1 %3643, %v542_v28   ;;  %v583_v28 = vld [vmem:[%s3773_s28 + $0x1d0] sm:$0xff] }
  0x35   : > { %672 = vperm.xlu0 %3642, %v541_v29   ;;  %v3676_v29 = vld [vmem:[%s3778_s12 + $0xf0] sm:$0xff]  }
  0x37   : > { %3518 = vmatmul.mubr.msk.bf16.gmra.mrb[16].mxu0 %vm1152_vm0, %v3655_v30  ;;  %v586_v30 = vld [vmem:[%s3773_s28 + $0x1e8] sm:$0xff] }
  0x38   : > { %687 = vperm.xlu1 %3643, %v544_v31   ;;  %3521 = vmatprep.mubr.msk.bf16.mxu0 %vm1152_vm0, %v3656_v33  ;;  %v585_v31 = vld [vmem:[%s3773_s28 + $0x1e0] sm:$0xff]  ;;  %v588_v33 = vld [vmem:[%s3773_s28 + $0x1f8] sm:$0xff] }
  0x39   : > { %682 = vperm.xlu0 %3642, %v543_v32   ;;  %v3677_v32 = vld [vmem:[%s3778_s12 + $0xf8] sm:$0xff]  }
  0x3c   : > { %697 = vperm.xlu1 %3643, %v546_v34   ;;  %v587_v34 = vld [vmem:[%s3773_s28 + $0x1f0] sm:$0xff]  ;;  %s4883_s28 = scalar_lea.vmem %s5091_s11, %s3767_s24 }
  0x3d   : > { %692 = vperm.xlu0 %3642, %v545_v35   ;;  %v1539_v35 = vld [vmem:[%s3911_s15 + $0x8] sm:$0xff] }
  0x3f   : > { %3522 = vmatmul.mubr.msk.bf16.gmra.mrb[20].mxu0 %vm1152_vm0, %v3657_v36  ;;  %v1538_v36 = vld [vmem:[%s3911_s15] sm:$0xff] }
  0x40   : > { %707 = vperm.xlu1 %3643, %v548_v37   ;;  %3525 = vmatprep.mubr.msk.bf16.mxu0 %vm1152_vm0, %v3658_v39  ;;  %v1541_v39 = vld [vmem:[%s3911_s15 + $0x18] sm:$0xff] }
  0x41   : > { %702 = vperm.xlu0 %3642, %v547_v38  }
  0x44   : > { %717 = vperm.xlu1 %3643, %v550_v40   ;;  %v1540_v40 = vld [vmem:[%s3911_s15 + $0x10] sm:$0xff] }
  0x45   : > { %712 = vperm.xlu0 %3642, %v549_v41  }
  0x47   : > { %3526 = vmatmul.mubr.msk.bf16.gmra.mrb[24].mxu0 %vm1152_vm0, %v3659_v42 }
  0x48   : > { %727 = vperm.xlu1 %3643, %v552_v43   ;;  %3529 = vmatprep.mubr.msk.bf16.mxu0 %vm1152_vm0, %v3660_v45  ;;  %v1543_v43 = vld [vmem:[%s3911_s15 + $0x28] sm:$0xff] }
  0x49   : > { %722 = vperm.xlu0 %3642, %v551_v44   ;;  %v1542_v44 = vld [vmem:[%s3911_s15 + $0x20] sm:$0xff] }
  0x4c   : > { %737 = vperm.xlu1 %3643, %v554_v46  }
  0x4d   : > { %732 = vperm.xlu0 %3642, %v553_v47   ;;  %v1545_v47 = vld [vmem:[%s3911_s15 + $0x38] sm:$0xff] }
  0x4f   : > { %3530 = vmatmul.mubr.msk.bf16.gmra.mrb[28].mxu0 %vm1152_vm0, %v3661_v48  ;;  %v1544_v48 = vld [vmem:[%s3911_s15 + $0x30] sm:$0xff] }
  0x50   : > { %747 = vperm.xlu1 %3643, %v556_v49   ;;  %3533 = vmatprep.mubr.msk.bf16.mxu0 %vm1152_vm0, %v3662_v51  ;;  %v1547_v51 = vld [vmem:[%s3911_s15 + $0x48] sm:$0xff] }
  0x51   : > { %742 = vperm.xlu0 %3642, %v555_v50  }
  0x54   : > { %757 = vperm.xlu1 %3643, %v558_v52   ;;  %v1546_v52 = vld [vmem:[%s3911_s15 + $0x40] sm:$0xff] }
  0x55   : > { %752 = vperm.xlu0 %3642, %v557_v53  }
  0x57   : > { %3534 = vmatmul.mubr.msk.bf16.gmra.mrb[32].mxu0 %vm1152_vm0, %v3663_v54 }
  0x58   : > { %767 = vperm.xlu1 %3643, %v560_v55   ;;  %3537 = vmatprep.mubr.msk.bf16.mxu0 %vm1152_vm0, %v3664_v57  ;;  %v1549_v55 = vld [vmem:[%s3911_s15 + $0x58] sm:$0xff] }
  0x59   : > { %762 = vperm.xlu0 %3642, %v559_v56   ;;  %v1548_v56 = vld [vmem:[%s3911_s15 + $0x50] sm:$0xff] }
  0x5c   : > { %777 = vperm.xlu1 %3643, %v562_v58  }
  0x5d   : > { %772 = vperm.xlu0 %3642, %v561_v59   ;;  %v1551_v59 = vld [vmem:[%s3911_s15 + $0x68] sm:$0xff] }
  0x5f   : > { %3538 = vmatmul.mubr.msk.bf16.gmra.mrb[36].mxu0 %vm1152_vm0, %v3665_v60  ;;  %v1550_v60 = vld [vmem:[%s3911_s15 + $0x60] sm:$0xff] }
  0x60   : > { %787 = vperm.xlu1 %3643, %v564_v61   ;;  %3541 = vmatprep.mubr.msk.bf16.mxu0 %vm1152_vm0, %v3666_v63  ;;  %v1553_v63 = vld [vmem:[%s3911_s15 + $0x78] sm:$0xff] }
  0x61   : > { %782 = vperm.xlu0 %3642, %v563_v62  }
  0x64   : > { %797 = vperm.xlu1 %3643, %v566_v0   ;;  %v1552_v0 = vld [vmem:[%s3911_s15 + $0x70] sm:$0xff] }
  0x65   : > { %792 = vperm.xlu0 %3642, %v565_v1  }
  0x67   : > { %3542 = vmatmul.mubr.msk.bf16.gmra.mrb[40].mxu0 %vm1152_vm0, %v3667_v2 }
  0x68   : > { %807 = vperm.xlu1 %3643, %v568_v3   ;;  %3545 = vmatprep.mubr.msk.bf16.mxu0 %vm1152_vm0, %v3668_v5  ;;  %v1555_v3 = vld [vmem:[%s3911_s15 + $0x88] sm:$0xff] }
  0x69   : > { %802 = vperm.xlu0 %3642, %v567_v4   ;;  %v1554_v4 = vld [vmem:[%s3911_s15 + $0x80] sm:$0xff] }
  0x6c   : > { %817 = vperm.xlu1 %3643, %v570_v6  }
  0x6d   : > { %812 = vperm.xlu0 %3642, %v569_v7   ;;  %v1557_v7 = vld [vmem:[%s3911_s15 + $0x98] sm:$0xff] }
  0x6f   : > { %3546 = vmatmul.mubr.msk.bf16.gmra.mrb[44].mxu0 %vm1152_vm0, %v3669_v8  ;;  %v1556_v8 = vld [vmem:[%s3911_s15 + $0x90] sm:$0xff] }
  0x70   : > { %827 = vperm.xlu1 %3643, %v572_v9   ;;  %3549 = vmatprep.mubr.msk.bf16.mxu0 %vm1152_vm0, %v3670_v11  ;;  %v1559_v11 = vld [vmem:[%s3911_s15 + $0xa8] sm:$0xff] }
  0x71   : > { %822 = vperm.xlu0 %3642, %v571_v10  }
  0x74   : > { %837 = vperm.xlu1 %3643, %v574_v12   ;;  %v1558_v12 = vld [vmem:[%s3911_s15 + $0xa0] sm:$0xff] }
  0x75   : > { %832 = vperm.xlu0 %3642, %v573_v13  }
  0x77   : > { %3550 = vmatmul.mubr.msk.bf16.gmra.mrb[48].mxu0 %vm1152_vm0, %v3671_v14 }
  0x78   : > { %847 = vperm.xlu1 %3643, %v576_v15   ;;  %3553 = vmatprep.mubr.msk.bf16.mxu0 %vm1152_vm0, %v3672_v17  ;;  %v1561_v15 = vld [vmem:[%s3911_s15 + $0xb8] sm:$0xff] }
  0x79   : > { %842 = vperm.xlu0 %3642, %v575_v16   ;;  %v1560_v16 = vld [vmem:[%s3911_s15 + $0xb0] sm:$0xff] }
  0x7c   : > { %857 = vperm.xlu1 %3643, %v578_v18  }
  0x7d   : > { %852 = vperm.xlu0 %3642, %v577_v19   ;;  %v2057_v19 = vld [vmem:[%s3986_s19] sm:$0xff] }
  0x7f   : > { %3554 = vmatmul.mubr.msk.bf16.gmra.mrb[52].mxu0 %vm1152_vm0, %v3673_v20  ;;  %v1562_v20 = vld [vmem:[%s3911_s15 + $0xc0] sm:$0xff] }
  0x80   : > { %867 = vperm.xlu1 %3643, %v580_v21   ;;  %3557 = vmatprep.mubr.msk.bf16.mxu0 %vm1152_vm0, %v3674_v23  ;;  %v2059_v23 = vld [vmem:[%s3986_s19 + $0x10] sm:$0xff] }
  0x81   : > { %862 = vperm.xlu0 %3642, %v579_v22  }
  0x84   : > { %877 = vperm.xlu1 %3643, %v582_v24   ;;  %v2058_v24 = vld [vmem:[%s3986_s19 + $0x8] sm:$0xff] }
  0x85   : > { %872 = vperm.xlu0 %3642, %v581_v25  }
  0x87   : > { %3558 = vmatmul.mubr.msk.bf16.gmra.mrb[56].mxu0 %vm1152_vm0, %v3675_v26 }
  0x88   : > { %887 = vperm.xlu1 %3643, %v584_v27   ;;  %3561 = vmatprep.mubr.msk.bf16.mxu0 %vm1152_vm0, %v3676_v29  ;;  %v2061_v27 = vld [vmem:[%s3986_s19 + $0x20] sm:$0xff] }
  0x89   : > { %882 = vperm.xlu0 %3642, %v583_v28   ;;  %v2060_v28 = vld [vmem:[%s3986_s19 + $0x18] sm:$0xff] }
  0x8c   : > { %897 = vperm.xlu1 %3643, %v586_v30  }
  0x8d   : > { %892 = vperm.xlu0 %3642, %v585_v31   ;;  %v2063_v31 = vld [vmem:[%s3986_s19 + $0x30] sm:$0xff] }
  0x8f   : > { %3562 = vmatmul.mubr.msk.bf16.gmra.mrb[60].mxu0 %vm1152_vm0, %v3677_v32  ;;  %v2062_v32 = vld [vmem:[%s3986_s19 + $0x28] sm:$0xff] }
  0x90   : > { %907 = vperm.xlu1 %3643, %v588_v33   ;;  %v3678_v33 = vld [vmem:[%s5089_s9] sm:$0xff]  }
  0x91   : > { %902 = vperm.xlu0 %3642, %v587_v34   ;;  %3565 = vmatprep.subr.bf16.mxu1 %v3678_v33 }
  0x92   : > { %3566 = vmatpush3.bf16.msra.mxu1 %v3678_v33 }
  0x93   : > { %v3916_v37 = vpop.permute.xlu1 %602 }
  0x94   : > { %v3918_v38 = vpop.permute.xlu0 %592  ;;  %1610 = vperm.xlu1 %3643, %v1539_v35  }
  0x95   : > { %1605 = vperm.xlu0 %3642, %v1538_v36   ;;  %v2065_v36 = vld [vmem:[%s3986_s19 + $0x40] sm:$0xff] }
  0x97   : > { %v3922_v41 = vpop.permute.xlu1 %607 }
  0x98   : > { %v3924_v42 = vpop.permute.xlu0 %597  ;;  %1620 = vperm.xlu1 %3643, %v1541_v39   ;;  %v2064_v39 = vld [vmem:[%s3986_s19 + $0x38] sm:$0xff] }
  0x99   : > { %1615 = vperm.xlu0 %3642, %v1540_v40   ;;  %v3679_v40 = vld [vmem:[%s5089_s9 + $0x8] sm:$0xff]  }
  0x9a   : > { %3567 = vmatprep.subr.bf16.mxu1 %v3679_v40 }
  0x9b   : > { %v3928_v45 = vpop.permute.xlu1 %617  ;;  %3568 = vmatpush3.bf16.msra.mxu1 %v3679_v40 }
  0x9c   : > { %v3930_v46 = vpop.permute.xlu0 %612  ;;  %1630 = vperm.xlu1 %3643, %v1543_v43  }
  0x9d   : > { %1625 = vperm.xlu0 %3642, %v1542_v44  }
  0x9f   : > { %v3934_v49 = vpop.permute.xlu1 %627 }
  0xa0   : > { %v3936_v50 = vpop.permute.xlu0 %622  ;;  %1640 = vperm.xlu1 %3643, %v1545_v47   ;;  %v2067_v47 = vld [vmem:[%s3986_s19 + $0x50] sm:$0xff] }
  0xa1   : > { %1635 = vperm.xlu0 %3642, %v1544_v48   ;;  %v2066_v48 = vld [vmem:[%s3986_s19 + $0x48] sm:$0xff] }
  0xa3   : > { %v3940_v53 = vpop.permute.xlu1 %637 }
  0xa4   : > { %v3942_v54 = vpop.permute.xlu0 %632  ;;  %1650 = vperm.xlu1 %3643, %v1547_v51  }
  0xa5   : > { %1645 = vperm.xlu0 %3642, %v1546_v52  }
  0xa7   : > { %v3946_v57 = vpop.permute.xlu1 %647 }
  0xa8   : > { %v3948_v58 = vpop.permute.xlu0 %642  ;;  %1660 = vperm.xlu1 %3643, %v1549_v55   ;;  %v2069_v55 = vld [vmem:[%s3986_s19 + $0x60] sm:$0xff] }
  0xa9   : > { %1655 = vperm.xlu0 %3642, %v1548_v56   ;;  %v2068_v56 = vld [vmem:[%s3986_s19 + $0x58] sm:$0xff] }
  0xab   : > { %v3952_v61 = vpop.permute.xlu1 %657 }
  0xac   : > { %v3954_v62 = vpop.permute.xlu0 %652  ;;  %1670 = vperm.xlu1 %3643, %v1551_v59  }
  0xad   : > { %1665 = vperm.xlu0 %3642, %v1550_v60  }
  0xaf   : > { %v3958_v1 = vpop.permute.xlu1 %667 }
  0xb0   : > { %v3960_v2 = vpop.permute.xlu0 %662  ;;  %1680 = vperm.xlu1 %3643, %v1553_v63   ;;  %v2071_v63 = vld [vmem:[%s3986_s19 + $0x70] sm:$0xff] }
  0xb1   : > { %1675 = vperm.xlu0 %3642, %v1552_v0   ;;  %v2070_v0 = vld [vmem:[%s3986_s19 + $0x68] sm:$0xff] }
  0xb3   : > { %v3964_v5 = vpop.permute.xlu1 %677 }
  0xb4   : > { %v3966_v6 = vpop.permute.xlu0 %672  ;;  %1690 = vperm.xlu1 %3643, %v1555_v3  }
  0xb5   : > { %1685 = vperm.xlu0 %3642, %v1554_v4  }
  0xb7   : > { %v3970_v9 = vpop.permute.xlu1 %687 }
  0xb8   : > { %v3972_v10 = vpop.permute.xlu0 %682  ;;  %1700 = vperm.xlu1 %3643, %v1557_v7   ;;  %v2073_v7 = vld [vmem:[%s3986_s19 + $0x80] sm:$0xff] }
  0xb9   : > { %1695 = vperm.xlu0 %3642, %v1556_v8   ;;  %v2072_v8 = vld [vmem:[%s3986_s19 + $0x78] sm:$0xff] }
  0xbb   : > { %v3976_v13 = vpop.permute.xlu1 %697 }
  0xbc   : > { %5092 = vst [vmem:[#allocation2_spill] sm:$0xff] %v3976_v13  ;;  %v3978_v14 = vpop.permute.xlu0 %692  ;;  %1710 = vperm.xlu1 %3643, %v1559_v11  }
  0xbd   : > { %5093 = vst [vmem:[#allocation3_spill] sm:$0xff] %v3978_v14  ;;  %1705 = vperm.xlu0 %3642, %v1558_v12  }
  0xbf   : > { %v3988_v17 = vpop.permute.xlu1 %707 }
  0xc0   : > { %5094 = vst [vmem:[#allocation4_spill] sm:$0xff] %v3988_v17  ;;  %v3990_v18 = vpop.permute.xlu0 %702  ;;  %1720 = vperm.xlu1 %3643, %v1561_v15   ;;  %v2075_v15 = vld [vmem:[%s3986_s19 + $0x90] sm:$0xff] }
  0xc1   : > { %5095 = vst [vmem:[#allocation5_spill] sm:$0xff] %v3990_v18  ;;  %1715 = vperm.xlu0 %3642, %v1560_v16   ;;  %v2074_v16 = vld [vmem:[%s3986_s19 + $0x88] sm:$0xff]  ;;  %v2096_v18 = vld [vmem:[%s3986_s19 + $0x138] sm:$0xff] }
  0xc3   : > { %v3994_v21 = vpop.permute.xlu1 %717 }
  0xc4   : > { %5096 = vst [vmem:[#allocation6_spill] sm:$0xff] %v3994_v21  ;;  %v3996_v22 = vpop.permute.xlu0 %712  ;;  %2124 = vperm.xlu1 %3643, %v2057_v19  }
  0xc5   : > { %5097 = vst [vmem:[#allocation7_spill] sm:$0xff] %v3996_v22  ;;  %1725 = vperm.xlu0 %3642, %v1562_v20  }
  0xc7   : > { %v4000_v25 = vpop.permute.xlu1 %727 }
  0xc8   : > { %5098 = vst [vmem:[#allocation8_spill] sm:$0xff] %v4000_v25  ;;  %v4002_v26 = vpop.permute.xlu0 %722  ;;  %2134 = vperm.xlu1 %3643, %v2059_v23   ;;  %v2077_v23 = vld [vmem:[%s3986_s19 + $0xa0] sm:$0xff]  ;;  %v2092_v25 = vld [vmem:[%s3986_s19 + $0x118] sm:$0xff] }
  0xc9   : > { %5099 = vst [vmem:[#allocation9_spill] sm:$0xff] %v4002_v26  ;;  %2129 = vperm.xlu0 %3642, %v2058_v24   ;;  %v2076_v24 = vld [vmem:[%s3986_s19 + $0x98] sm:$0xff] }
  0xcb   : > { %v4006_v29 = vpop.permute.xlu1 %737 }
  0xcc   : > { %5100 = vst [vmem:[#allocation10_spill] sm:$0xff] %v4006_v29  ;;  %v4008_v30 = vpop.permute.xlu0 %732  ;;  %2144 = vperm.xlu1 %3643, %v2061_v27  }
  0xcd   : > { %5101 = vst [vmem:[#allocation11_spill] sm:$0xff] %v4008_v30  ;;  %2139 = vperm.xlu0 %3642, %v2060_v28  }
  0xcf   : > { %v4015_v34 = vpop.permute.xlu1 %747 }
  0xd0   : > { %5102 = vst [vmem:[#allocation12_spill] sm:$0xff] %v4015_v34  ;;  %v4017_v35 = vpop.permute.xlu0 %742  ;;  %2154 = vperm.xlu1 %3643, %v2063_v31   ;;  %v2089_v34 = vld [vmem:[%s3986_s19 + $0x100] sm:$0xff] }
  0xd1   : > { %5103 = vst [vmem:[#allocation13_spill] sm:$0xff] %v4017_v35  ;;  %2149 = vperm.xlu0 %3642, %v2062_v32   ;;  %v2090_v35 = vld [vmem:[%s3986_s19 + $0x108] sm:$0xff] }
  0xd3   : > { %v4024_v43 = vpop.permute.xlu1 %757 }
  0xd4   : > { %5104 = vst [vmem:[#allocation14_spill] sm:$0xff] %v4024_v43  ;;  %v4026_v44 = vpop.permute.xlu0 %752  ;;  %2164 = vperm.xlu1 %3643, %v2065_v36   ;;  %v2079_v36 = vld [vmem:[%s3986_s19 + $0xb0] sm:$0xff] }
  0xd5   : > { %5105 = vst [vmem:[#allocation15_spill] sm:$0xff] %v4026_v44  ;;  %2159 = vperm.xlu0 %3642, %v2064_v39   ;;  %v2078_v39 = vld [vmem:[%s3986_s19 + $0xa8] sm:$0xff] }
  0xd7   : > { %v4030_v51 = vpop.permute.xlu1 %767 }
  0xd8   : > { %5106 = vst [vmem:[#allocation16_spill] sm:$0xff] %v4030_v51  ;;  %v4032_v52 = vpop.permute.xlu0 %762  ;;  %2174 = vperm.xlu1 %3643, %v2067_v47  }
  0xd9   : > { %5107 = vst [vmem:[#allocation17_spill] sm:$0xff] %v4032_v52  ;;  %2169 = vperm.xlu0 %3642, %v2066_v48  }
  0xdb   : > { %v4036_v59 = vpop.permute.xlu1 %777 }
  0xdc   : > { %5108 = vst [vmem:[#allocation18_spill] sm:$0xff] %v4036_v59  ;;  %v4038_v60 = vpop.permute.xlu0 %772  ;;  %2184 = vperm.xlu1 %3643, %v2069_v55   ;;  %v1563_v55 = vld [vmem:[%s3911_s15 + $0xc8] sm:$0xff] }
  0xdd   : > { %5109 = vst [vmem:[#allocation19_spill] sm:$0xff] %v4038_v60  ;;  %2179 = vperm.xlu0 %3642, %v2068_v56   ;;  %v2080_v56 = vld [vmem:[%s3986_s19 + $0xb8] sm:$0xff] }
  0xdf   : > { %v4042_v3 = vpop.permute.xlu1 %787 }
  0xe0   : > { %5110 = vst [vmem:[#allocation20_spill] sm:$0xff] %v4042_v3  ;;  %v4044_v4 = vpop.permute.xlu0 %782  ;;  %2194 = vperm.xlu1 %3643, %v2071_v63  }
  0xe1   : > { %5111 = vst [vmem:[#allocation21_spill] sm:$0xff] %v4044_v4  ;;  %2189 = vperm.xlu0 %3642, %v2070_v0  }
  0xe3   : > { %v4048_v11 = vpop.permute.xlu1 %797 }
  0xe4   : > { %5112 = vst [vmem:[#allocation22_spill] sm:$0xff] %v4048_v11  ;;  %v4050_v12 = vpop.permute.xlu0 %792  ;;  %2204 = vperm.xlu1 %3643, %v2073_v7  }
  0xe5   : > { %5113 = vst [vmem:[#allocation23_spill] sm:$0xff] %v4050_v12  ;;  %2199 = vperm.xlu0 %3642, %v2072_v8  }
  0xe7   : > { %v4054_v19 = vpop.permute.xlu1 %807 }
  0xe8   : > { %5114 = vst [vmem:[#allocation24_spill] sm:$0xff] %v4054_v19  ;;  %v4056_v20 = vpop.permute.xlu0 %802  ;;  %2214 = vperm.xlu1 %3643, %v2075_v15  }
  0xe9   : > { %5115 = vst [vmem:[#allocation25_spill] sm:$0xff] %v4056_v20  ;;  %2209 = vperm.xlu0 %3642, %v2074_v16   ;;  %v1565_v16 = vld [vmem:[%s3911_s15 + $0xd8] sm:$0xff] }
  0xea   : > { %v4060_v27 = vpop.f32.mrb[0].mxu0 }
  0xeb   : > { %v4062_v28 = vpop.permute.xlu1 %817  ;;  %v4066_v32 = vpop.f32.mrb[1].mxu0 }
  0xec   : > { %5116 = vst [vmem:[#allocation26_spill] sm:$0xff] %v4062_v28  ;;  %v4064_v31 = vpop.permute.xlu0 %812  ;;  %2224 = vperm.xlu1 %3643, %v2077_v23   ;;  %v4068_v33 = vpop.f32.mrb[2].mxu0  ;;  %v1564_v23 = vld [vmem:[%s3911_s15 + $0xd0] sm:$0xff] }
  0xed   : > { %5117 = vst [vmem:[#allocation27_spill] sm:$0xff] %v4064_v31  ;;  %2219 = vperm.xlu0 %3642, %v2076_v24   ;;  %v4072_v40 = vpop.f32.mrb[3].mxu0 }
  0xef   : > { %v4074_v47 = vpop.permute.xlu1 %827 }
  0xf0   : > { %5118 = vst [vmem:[#allocation28_spill] sm:$0xff] %v4074_v47  ;;  %v4076_v48 = vpop.permute.xlu0 %822  ;;  %2234 = vperm.xlu1 %3643, %v2079_v36  }
  0xf1   : > { %5119 = vst [vmem:[#allocation29_spill] sm:$0xff] %v4076_v48  ;;  %2229 = vperm.xlu0 %3642, %v2078_v39  }
  0xf2   : > { %v4080_v63 = vpop.f32.mrb[4].mxu0 }
  0xf3   : > { %v4082_v0 = vpop.permute.xlu1 %837  ;;  %v4086_v8 = vpop.f32.mrb[5].mxu0 }
  0xf4   : > { %5120 = vst [vmem:[#allocation30_spill] sm:$0xff] %v4082_v0  ;;  %v4084_v7 = vpop.permute.xlu0 %832  ;;  %1730 = vperm.xlu1 %3643, %v1563_v55   ;;  %v4088_v15 = vpop.f32.mrb[6].mxu0  ;;  %v2082_v0 = vld [vmem:[%s3986_s19 + $0xc8] sm:$0xff] }
  0xf5   : > { %5121 = vst [vmem:[#allocation31_spill] sm:$0xff] %v4084_v7  ;;  %2239 = vperm.xlu0 %3642, %v2080_v56   ;;  %v4092_v24 = vpop.f32.mrb[7].mxu0  ;;  %v2081_v7 = vld [vmem:[%s3986_s19 + $0xc0] sm:$0xff] }
  0xf7   : > { %v4094_v36 = vpop.permute.xlu1 %847 }
  0xf8   : > { %5122 = vst [vmem:[#allocation32_spill] sm:$0xff] %v4094_v36  ;;  %v4096_v39 = vpop.permute.xlu0 %842  ;;  %1740 = vperm.xlu1 %3643, %v1565_v16   ;;  %v2084_v36 = vld [vmem:[%s3986_s19 + $0xd8] sm:$0xff]  ;;  %v2083_v16 = vld [vmem:[%s3986_s19 + $0xd0] sm:$0xff] }
  0xf9   : > { %5123 = vst [vmem:[#allocation33_spill] sm:$0xff] %v4096_v39  ;;  %1735 = vperm.xlu0 %3642, %v1564_v23  }
  0xfa   : > { %v4100_v55 = vpop.f32.mrb[8].mxu0 }
  0xfb   : > { %v4102_v56 = vpop.permute.xlu1 %857  ;;  %v4106_v47 = vpop.f32.mrb[9].mxu0 }
  0xfc   : > { %5124 = vst [vmem:[#allocation34_spill] sm:$0xff] %v4102_v56  ;;  %v4104_v48 = vpop.permute.xlu0 %852  ;;  %2249 = vperm.xlu1 %3643, %v2082_v0   ;;  %v4108_v31 = vpop.f32.mrb[10].mxu0  ;;  %v1567_v56 = vld [vmem:[%s3911_s15 + $0xe8] sm:$0xff] }
  0xfd   : > { %5125 = vst [vmem:[#allocation35_spill] sm:$0xff] %v4104_v48  ;;  %2244 = vperm.xlu0 %3642, %v2081_v7   ;;  %v4112_v23 = vpop.f32.mrb[11].mxu0  ;;  %v1566_v48 = vld [vmem:[%s3911_s15 + $0xe0] sm:$0xff] }
  0xff   : > { %v4114_v39 = vpop.permute.xlu1 %867 }
 0x100   : > { %5126 = vst [vmem:[#allocation36_spill] sm:$0xff] %v4114_v39  ;;  %v4116_v28 = vpop.permute.xlu0 %862  ;;  %2259 = vperm.xlu1 %3643, %v2084_v36   ;;  %v1569_v39 = vld [vmem:[%s3911_s15 + $0xf8] sm:$0xff]  ;;  %v1568_v36 = vld [vmem:[%s3911_s15 + $0xf0] sm:$0xff] }
 0x101   : > { %5127 = vst [vmem:[#allocation37_spill] sm:$0xff] %v4116_v28  ;;  %2254 = vperm.xlu0 %3642, %v2083_v16  }
 0x102   : > { %v4120_v0 = vpop.f32.mrb[12].mxu0 }
 0x103   : > { %v4122_v7 = vpop.permute.xlu1 %877  ;;  %v4126_v19 = vpop.f32.mrb[13].mxu0 }
 0x104   : > { %5128 = vst [vmem:[#allocation38_spill] sm:$0xff] %v4122_v7  ;;  %v4124_v20 = vpop.permute.xlu0 %872  ;;  %1750 = vperm.xlu1 %3643, %v1567_v56   ;;  %v4128_v12 = vpop.f32.mrb[14].mxu0  ;;  %v2086_v7 = vld [vmem:[%s3986_s19 + $0xe8] sm:$0xff] }
 0x105   : > { %5129 = vst [vmem:[#allocation39_spill] sm:$0xff] %v4124_v20  ;;  %1745 = vperm.xlu0 %3642, %v1566_v48   ;;  %5130 = vst [vmem:[#allocation40_spill] sm:$0xff] %v4128_v12  ;;  %v4132_v16 = vpop.f32.mrb[15].mxu0  ;;  %v2085_v20 = vld [vmem:[%s3986_s19 + $0xe0] sm:$0xff] }
 0x107   : > { %v4134_v28 = vpop.permute.xlu1 %887 }
 0x108   : > { %5131 = vst [vmem:[#allocation41_spill] sm:$0xff] %v4134_v28  ;;  %v4136_v11 = vpop.permute.xlu0 %882  ;;  %1760 = vperm.xlu1 %3643, %v1569_v39   ;;  %v2088_v28 = vld [vmem:[%s3986_s19 + $0xf8] sm:$0xff]  ;;  %v2087_v39 = vld [vmem:[%s3986_s19 + $0xf0] sm:$0xff] }
 0x109   : > { %5132 = vst [vmem:[#allocation42_spill] sm:$0xff] %v4136_v11  ;;  %1755 = vperm.xlu0 %3642, %v1568_v36  }
 0x10a   : > { %v4140_v56 = vpop.f32.mrb[16].mxu0 }
 0x10b   : > { %5133 = vst [vmem:[#allocation43_spill] sm:$0xff] %v4140_v56  ;;  %v4142_v48 = vpop.permute.xlu1 %897  ;;  %v4146_v3 = vpop.f32.mrb[17].mxu0  ;;  %v1578_v56 = vld [vmem:[%s3911_s15 + $0x140] sm:$0xff] }
 0x10c   : > { %5134 = vst [vmem:[#allocation44_spill] sm:$0xff] %v4142_v48  ;;  %v4144_v4 = vpop.permute.xlu0 %892  ;;  %5136 = vst [vmem:[#allocation46_spill] sm:$0xff] %v4146_v3  ;;  %2269 = vperm.xlu1 %3643, %v2086_v7   ;;  %v4148_v60 = vpop.f32.mrb[18].mxu0  ;;  %v1571_v48 = vld [vmem:[%s3911_s15 + $0x108] sm:$0xff] }
 0x10d   : > { %5135 = vst [vmem:[#allocation45_spill] sm:$0xff] %v4144_v4  ;;  %2264 = vperm.xlu0 %3642, %v2085_v20   ;;  %5137 = vst [vmem:[#allocation47_spill] sm:$0xff] %v4148_v60  ;;  %v4152_v36 = vpop.f32.mrb[19].mxu0  ;;  %v1570_v4 = vld [vmem:[%s3911_s15 + $0x100] sm:$0xff] }
 0x10e   : > { %5138 = vst [vmem:[#allocation48_spill] sm:$0xff] %v4152_v36  ;;  %v1581_v36 = vld [vmem:[%s3911_s15 + $0x158] sm:$0xff] }
 0x10f   : > { %v4154_v11 = vpop.permute.xlu1 %907 }
 0x110   : > { %5139 = vst [vmem:[#allocation49_spill] sm:$0xff] %v4154_v11  ;;  %v4156_v59 = vpop.permute.xlu0 %902  ;;  %2279 = vperm.xlu1 %3643, %v2088_v28   ;;  %v1573_v11 = vld [vmem:[%s3911_s15 + $0x118] sm:$0xff]  ;;  %v1572_v28 = vld [vmem:[%s3911_s15 + $0x110] sm:$0xff] }
 0x111   : > { %5140 = vst [vmem:[#allocation50_spill] sm:$0xff] %v4156_v59  ;;  %2274 = vperm.xlu0 %3642, %v2087_v39  }
 0x112   : > { %v4160_v7 = vpop.f32.mrb[20].mxu0 }
 0x113   : > { %5141 = vst [vmem:[#allocation51_spill] sm:$0xff] %v4160_v7  ;;  %v4162_v20 = vpop.permute.xlu1 %1610  ;;  %v4166_v51 = vpop.f32.mrb[21].mxu0 }
 0x114   : > { %v4164_v52 = vpop.permute.xlu0 %1605  ;;  %5142 = vst [vmem:[#allocation52_spill] sm:$0xff] %v4166_v51  ;;  %1770 = vperm.xlu1 %3643, %v1571_v48   ;;  %v4168_v44 = vpop.f32.mrb[22].mxu0  ;;  %v2093_v51 = vld [vmem:[%s3986_s19 + $0x120] sm:$0xff] }
 0x115   : > { %1765 = vperm.xlu0 %3642, %v1570_v4   ;;  %5143 = vst [vmem:[#allocation53_spill] sm:$0xff] %v4168_v44  ;;  %v4172_v39 = vpop.f32.mrb[23].mxu0  ;;  %v1574_v44 = vld [vmem:[%s3911_s15 + $0x120] sm:$0xff] }
 0x116   : > { %5144 = vst [vmem:[#allocation54_spill] sm:$0xff] %v4172_v39  ;;  %v1577_v39 = vld [vmem:[%s3911_s15 + $0x138] sm:$0xff] }
 0x117   : > { %v4174_v59 = vpop.permute.xlu1 %1620 }
 0x118   : > { %v4176_v43 = vpop.permute.xlu0 %1615  ;;  %1780 = vperm.xlu1 %3643, %v1573_v11   ;;  %v2091_v11 = vld [vmem:[%s3986_s19 + $0x110] sm:$0xff] }
 0x119   : > { %1775 = vperm.xlu0 %3642, %v1572_v28  }
 0x11a   : > { %v4180_v48 = vpop.f32.mrb[24].mxu0 }
 0x11b   : > { %5145 = vst [vmem:[#allocation55_spill] sm:$0xff] %v4180_v48  ;;  %v4182_v4 = vpop.permute.xlu1 %1630  ;;  %v4186_v29 = vpop.f32.mrb[25].mxu0  ;;  %v1575_v48 = vld [vmem:[%s3911_s15 + $0x128] sm:$0xff] }
 0x11c   : > { %v4184_v30 = vpop.permute.xlu0 %1625  ;;  %5146 = vst [vmem:[#allocation56_spill] sm:$0xff] %v4186_v29  ;;  %2289 = vperm.xlu1 %3643, %v2090_v35   ;;  %v4188_v26 = vpop.f32.mrb[26].mxu0 }
 0x11d   : > { %2284 = vperm.xlu0 %3642, %v2089_v34   ;;  %5147 = vst [vmem:[#allocation57_spill] sm:$0xff] %v4188_v26  ;;  %v4192_v28 = vpop.f32.mrb[27].mxu0 }
 0x11e   : > { %5148 = vst [vmem:[#allocation58_spill] sm:$0xff] %v4192_v28 }
 0x11f   : > { %v4194_v21 = vpop.permute.xlu1 %1640 }
 0x120   : > { %v4196_v22 = vpop.permute.xlu0 %1635  ;;  %2299 = vperm.xlu1 %3643, %v2092_v25   ;;  %v1576_v25 = vld [vmem:[%s3911_s15 + $0x130] sm:$0xff] }
 0x121   : > { %2294 = vperm.xlu0 %3642, %v2091_v11  }
 0x122   : > { %v4200_v35 = vpop.f32.mrb[28].mxu0 }
 0x123   : > { %5149 = vst [vmem:[#allocation59_spill] sm:$0xff] %v4200_v35  ;;  %v4202_v34 = vpop.permute.xlu1 %1650  ;;  %v4206_v29 = vpop.f32.mrb[29].mxu0  ;;  %v2094_v35 = vld [vmem:[%s3986_s19 + $0x128] sm:$0xff] }
 0x124   : > { %v4204_v26 = vpop.permute.xlu0 %1645  ;;  %5150 = vst [vmem:[#allocation60_spill] sm:$0xff] %v4206_v29  ;;  %1790 = vperm.xlu1 %3643, %v1575_v48   ;;  %v4208_v28 = vpop.f32.mrb[30].mxu0 }
 0x125   : > { %1785 = vperm.xlu0 %3642, %v1574_v44   ;;  %5151 = vst [vmem:[#allocation61_spill] sm:$0xff] %v4208_v28  ;;  %v4212_v11 = vpop.f32.mrb[31].mxu0 }
 0x126   : > { %5152 = vst [vmem:[#allocation62_spill] sm:$0xff] %v4212_v11 }
 0x127   : > { %v4214_v17 = vpop.permute.xlu1 %1660 }
 0x128   : > { %v4216_v7 = vpop.permute.xlu0 %1655  ;;  %1800 = vperm.xlu1 %3643, %v1577_v39   ;;  %v2095_v39 = vld [vmem:[%s3986_s19 + $0x130] sm:$0xff] }
 0x129   : > { %1795 = vperm.xlu0 %3642, %v1576_v25  }
 0x12a   : > { %v4220_v48 = vpop.f32.mrb[32].mxu0 }
 0x12b   : > { %5153 = vst [vmem:[#allocation63_spill] sm:$0xff] %v4220_v48  ;;  %v4222_v44 = vpop.permute.xlu1 %1670  ;;  %v4226_v29 = vpop.f32.mrb[33].mxu0  ;;  %v1579_v48 = vld [vmem:[%s3911_s15 + $0x148] sm:$0xff] }
 0x12c   : > { %v4224_v28 = vpop.permute.xlu0 %1665  ;;  %5154 = vst [vmem:[#allocation64_spill] sm:$0xff] %v4226_v29  ;;  %2309 = vperm.xlu1 %3643, %v2094_v35   ;;  %v4228_v11 = vpop.f32.mrb[34].mxu0 }
 0x12d   : > { %2304 = vperm.xlu0 %3642, %v2093_v51   ;;  %5155 = vst [vmem:[#allocation65_spill] sm:$0xff] %v4228_v11  ;;  %v4232_v25 = vpop.f32.mrb[35].mxu0 }
 0x12e   : > { %5156 = vst [vmem:[#allocation66_spill] sm:$0xff] %v4232_v25 }
 0x12f   : > { %v4234_v60 = vpop.permute.xlu1 %1680 }
 0x130   : > { %5157 = vst [vmem:[#allocation67_spill] sm:$0xff] %v4234_v60  ;;  %v4236_v14 = vpop.permute.xlu0 %1675  ;;  %2319 = vperm.xlu1 %3643, %v2096_v18   ;;  %v1580_v18 = vld [vmem:[%s3911_s15 + $0x150] sm:$0xff] }
 0x131   : > { %2314 = vperm.xlu0 %3642, %v2095_v39  }
 0x132   : > { %v4240_v35 = vpop.f32.mrb[36].mxu0 }
 0x133   : > { %5158 = vst [vmem:[#allocation68_spill] sm:$0xff] %v4240_v35  ;;  %v4242_v51 = vpop.permute.xlu1 %1690  ;;  %v4246_v29 = vpop.f32.mrb[37].mxu0  ;;  %v2098_v35 = vld [vmem:[%s3986_s19 + $0x148] sm:$0xff] }
 0x134   : > { %5159 = vst [vmem:[#allocation69_spill] sm:$0xff] %v4242_v51  ;;  %v4244_v11 = vpop.permute.xlu0 %1685  ;;  %5161 = vst [vmem:[#allocation71_spill] sm:$0xff] %v4246_v29  ;;  %1810 = vperm.xlu1 %3643, %v1579_v48   ;;  %v4248_v25 = vpop.f32.mrb[38].mxu0  ;;  %v2097_v51 = vld [vmem:[%s3986_s19 + $0x140] sm:$0xff]  ;;  %v2100_v29 = vld [vmem:[%s3986_s19 + $0x158] sm:$0xff] }
 0x135   : > { %5160 = vst [vmem:[#allocation70_spill] sm:$0xff] %v4244_v11  ;;  %1805 = vperm.xlu0 %3642, %v1578_v56   ;;  %5162 = vst [vmem:[#allocation72_spill] sm:$0xff] %v4248_v25  ;;  %v4252_v39 = vpop.f32.mrb[39].mxu0 }
 0x136   : > { %5163 = vst [vmem:[#allocation73_spill] sm:$0xff] %v4252_v39 }
 0x137   : > { %v4254_v13 = vpop.permute.xlu1 %1700 }
 0x138   : > { %5164 = vst [vmem:[#allocation74_spill] sm:$0xff] %v4254_v13  ;;  %v4256_v12 = vpop.permute.xlu0 %1695  ;;  %1820 = vperm.xlu1 %3643, %v1581_v36   ;;  %v2099_v13 = vld [vmem:[%s3986_s19 + $0x150] sm:$0xff]  ;;  %v4275_v36 = vld [vmem:[%s5085_s5] ss:$0 sm:$0xff] }
 0x139   : > { %5165 = vst [vmem:[#allocation75_spill] sm:$0xff] %v4256_v12  ;;  %1815 = vperm.xlu0 %3642, %v1580_v18   ;;  %v4280_v18 = vld [vmem:[%s5086_s6] ss:$0 sm:$0xff]  ;;  %v921_v3 = vmul.f32 %v4275_v36, %v3928_v45 }
 0x13a   : > { %v4260_v60 = vpop.f32.mrb[40].mxu0  ;;  %v1582_v12 = vld [vmem:[%s3911_s15 + $0x160] sm:$0xff]  ;;  %v1931_v45 = vmul.f32 %v4280_v18, %v4176_v43 }
 0x13b   : > { %5166 = vst [vmem:[#allocation76_spill] sm:$0xff] %v4260_v60  ;;  %v4262_v48 = vpop.permute.xlu1 %1710  ;;  %v4266_v25 = vpop.f32.mrb[41].mxu0 }
 0x13c   : > { %5167 = vst [vmem:[#allocation77_spill] sm:$0xff] %v4262_v48  ;;  %v4264_v56 = vpop.permute.xlu0 %1705  ;;  %5169 = vst [vmem:[#allocation79_spill] sm:$0xff] %v4266_v25  ;;  %2329 = vperm.xlu1 %3643, %v2098_v35   ;;  %v4268_v39 = vpop.f32.mrb[42].mxu0  ;;  %v4295_v48 = vld [vmem:[%s5087_s7] ss:$0 sm:$0xff] }
 0x13d   : > { %5168 = vst [vmem:[#allocation78_spill] sm:$0xff] %v4264_v56  ;;  %2324 = vperm.xlu0 %3642, %v2097_v51   ;;  %5170 = vst [vmem:[#allocation80_spill] sm:$0xff] %v4268_v39  ;;  %v4282_v60 = vpop.f32.mrb[43].mxu0  ;;  %v916_v51 = vmul.f32 %v4275_v36, %v3918_v38  ;;  %v1929_v39 = vmul.f32 %v4280_v18, %v4164_v52  ;;  %v1583_v56 = vld [vmem:[%s3911_s15 + $0x168] sm:$0xff]  ;;  %v917_v38 = vmul.f32 %v4275_v36, %v3924_v42 }
 0x13e   : > { %5171 = vst [vmem:[#allocation81_spill] sm:$0xff] %v4282_v60  ;;  %v4321_v42 = vmul.f32 %v4275_v36, %v3934_v49 }
 0x13f   : > { %v4284_v25 = vpop.permute.xlu1 %1720  ;;  %v1287_v49 = vadd.f32 %v4072_v40, %v917_v38  ;;  %v2102_v38 = vld [vmem:[%s3986_s19 + $0x168] sm:$0xff] }
 0x140   : > { %5172 = vst [vmem:[#allocation82_spill] sm:$0xff] %v4284_v25  ;;  %v4286_v35 = vpop.permute.xlu0 %1715  ;;  %2339 = vperm.xlu1 %3643, %v2100_v29   ;;  %v918_v25 = vmul.f32 %v4275_v36, %v3916_v37  ;;  %v1284_v29 = vadd.f32 %v4066_v32, %v916_v51 }
 0x141   : > { %5173 = vst [vmem:[#allocation83_spill] sm:$0xff] %v4286_v35  ;;  %2334 = vperm.xlu0 %3642, %v2099_v13   ;;  %v919_v13 = vmul.f32 %v4275_v36, %v3922_v41  ;;  %v920_v41 = vmul.f32 %v4275_v36, %v3930_v46  ;;  %v4337_v46 = vmul.f32 %v4275_v36, %v3942_v54  ;;  %v4350_v54 = vld [vmem:[%s5088_s8] ss:$0 sm:$0xff] }
 0x142   : > { %v4299_v60 = vpop.f32.mrb[44].mxu0  ;;  %v1993_v32 = vadd.f32 %v1929_v39, %v1284_v29  ;;  %v1292_v43 = vadd.f32 %v4060_v27, %v918_v25 }
 0x143   : > { %5174 = vst [vmem:[#allocation84_spill] sm:$0xff] %v4299_v60  ;;  %v2125_v52 = vpop.permute.xlu1 %2124  ;;  %v1930_v60 = vmul.f32 %v4280_v18, %v4162_v20  ;;  %v4315_v11 = vpop.f32.mrb[45].mxu0  ;;  %v1585_v20 = vld [vmem:[%s3911_s15 + $0x178] sm:$0xff]  ;;  %v1300_v25 = vadd.f32 %v4086_v8, %v920_v41 }
 0x144   : > { %v4308_v35 = vpop.permute.xlu0 %1725  ;;  %v2448_v37 = vmul.f32 %v4295_v48, %v2125_v52  ;;  %5176 = vst [vmem:[#allocation86_spill] sm:$0xff] %v4315_v11  ;;  %1830 = vperm.xlu1 %3643, %v1583_v56   ;;  %v4325_v51 = vpop.f32.mrb[46].mxu0  ;;  %v922_v52 = vmul.f32 %v4275_v36, %v3936_v50  ;;  %v1932_v56 = vmul.f32 %v4280_v18, %v4174_v59 }
 0x145   : > { %5175 = vst [vmem:[#allocation85_spill] sm:$0xff] %v4308_v35  ;;  %1825 = vperm.xlu0 %3642, %v1582_v12   ;;  %5177 = vst [vmem:[#allocation87_spill] sm:$0xff] %v4325_v51  ;;  %v1584_v35 = vld [vmem:[%s3911_s15 + $0x170] sm:$0xff]  ;;  %v4333_v12 = vmul.f32 %v4275_v36, %v3940_v53  ;;  %v4340_v39 = vpop.f32.mrb[47].mxu0  ;;  %v1933_v50 = vmul.f32 %v4280_v18, %v4184_v30  ;;  %v1994_v11 = vadd.f32 %v1930_v60, %v1287_v49 }
 0x146   : > { %v2512_v53 = vadd.f32 %v2448_v37, %v1993_v32  ;;  %v4356_v59 = vmul.f32 %v4275_v36, %v3946_v57  ;;  %v1295_v30 = vadd.f32 %v4068_v33, %v919_v13  ;;  %v1995_v60 = vadd.f32 %v1931_v45, %v1292_v43  ;;  %v2101_v37 = vld [vmem:[%s3986_s19 + $0x160] sm:$0xff] }
 0x147   : > { %v2135_v29 = vpop.permute.xlu1 %2134  ;;  %v4364_v32 = vmul.f32 %v4275_v36, %v3948_v58  ;;  %v1303_v49 = vadd.f32 %v4092_v24, %v921_v3  ;;  %v1997_v33 = vadd.f32 %v1933_v50, %v1300_v25  ;;  %v1935_v58 = vmul.f32 %v4280_v18, %v4196_v22  ;;  %v2104_v50 = vld [vmem:[%s3986_s19 + $0x178] sm:$0xff]  ;;  %v2103_v25 = vld [vmem:[%s3986_s19 + $0x170] sm:$0xff] }
 0x148   : > { %v2130_v51 = vpop.permute.xlu0 %2129  ;;  %v2450_v40 = vmul.f32 %v4295_v48, %v2135_v29  ;;  %1840 = vperm.xlu1 %3643, %v1585_v20   ;;  %v1996_v57 = vadd.f32 %v1932_v56, %v1295_v30  ;;  %v2583_v45 = vadd.f32 %v4350_v54, %v2512_v53  ;;  %v4388_v22 = vmul.f32 %v4275_v36, %v3958_v1 }
 0x149   : > { %v2449_v27 = vmul.f32 %v4295_v48, %v2130_v51  ;;  %1835 = vperm.xlu0 %3642, %v1584_v35   ;;  %v1934_v35 = vmul.f32 %v4280_v18, %v4182_v4  ;;  %v4380_v4 = vmul.f32 %v4275_v36, %v3952_v61  ;;  %v1308_v29 = vadd.f32 %v4080_v63, %v922_v52 }
 0x14a   : > { %v4369_v20 = vpop.f32.mrb[48].mxu0  ;;  %v2514_v13 = vadd.f32 %v2450_v40, %v1995_v60 }
 0x14b   : > { %v2513_v51 = vadd.f32 %v2449_v27, %v1994_v11  ;;  %v2145_v8 = vpop.permute.xlu1 %2144  ;;  %v4376_v24 = vpop.f32.mrb[49].mxu0  ;;  %v4384_v11 = vmul.f32 %v4275_v36, %v3954_v62  ;;  %v1998_v40 = vadd.f32 %v1934_v35, %v1303_v49  ;;  %v1936_v62 = vmul.f32 %v4280_v18, %v4194_v21 }
 0x14c   : > { %v2140_v41 = vpop.permute.xlu0 %2139  ;;  %v2452_v43 = vmul.f32 %v4295_v48, %v2145_v8  ;;  %2349 = vperm.xlu1 %3643, %v2102_v38   ;;  %v4390_v56 = vpop.f32.mrb[50].mxu0  ;;  %v2585_v1 = vadd.f32 %v4350_v54, %v2514_v13  ;;  %v4406_v35 = vmul.f32 %v4275_v36, %v3960_v2  ;;  %v1311_v21 = vadd.f32 %v4088_v15, %v4321_v42 }
 0x14d   : > { %v2451_v3 = vmul.f32 %v4295_v48, %v2140_v41  ;;  %2344 = vperm.xlu0 %3642, %v2101_v37   ;;  %v2584_v53 = vadd.f32 %v4350_v54, %v2513_v51  ;;  %v4395_v61 = vpop.f32.mrb[51].mxu0  ;;  %v2647_v37 = vmax.f32 %v2583_v45, 0.0  ;;  %v1999_v41 = vadd.f32 %v1935_v58, %v1308_v29 }
 0x14e   : > { %v2516_v27 = vadd.f32 %v2452_v43, %v1997_v33  ;;  %v1937_v51 = vmul.f32 %v4280_v18, %v4204_v26  ;;  %v1587_v33 = vld [vmem:[%s3911_s15 + $0x188] sm:$0xff]  ;;  %v4419_v2 = vmul.f32 %v4275_v36, %v3964_v5  ;;  %v1316_v15 = vadd.f32 %v4106_v47, %v4337_v46 }
 0x14f   : > { %v2515_v30 = vadd.f32 %v2451_v3, %v1996_v57  ;;  %v2155_v60 = vpop.permute.xlu1 %2154  ;;  %v2648_v8 = vmax.f32 %v2584_v53, 0.0  ;;  %v1939_v26 = vmul.f32 %v4280_v18, %v4216_v7  ;;  %v2649_v42 = vmax.f32 %v2585_v1, 0.0 }
 0x150   : > { %v2150_v38 = vpop.permute.xlu0 %2149  ;;  %v2454_v52 = vmul.f32 %v4295_v48, %v2155_v60  ;;  %2359 = vperm.xlu1 %3643, %v2104_v50   ;;  %v2587_v13 = vadd.f32 %v4350_v54, %v2516_v27  ;;  %v1586_v50 = vld [vmem:[%s3911_s15 + $0x180] sm:$0xff]  ;;  %v1324_v47 = vadd.f32 %v4100_v55, %v4364_v32  ;;  %v1938_v7 = vmul.f32 %v4280_v18, %v4202_v34  ;;  %v1589_v60 = vld [vmem:[%s3911_s15 + $0x198] sm:$0xff] }
 0x151   : > { %v2586_v63 = vadd.f32 %v4350_v54, %v2515_v30  ;;  %v2453_v49 = vmul.f32 %v4295_v48, %v2150_v38  ;;  %2354 = vperm.xlu0 %3642, %v2103_v25   ;;  %v2711_v57 = vpack.c.bf16 %v2648_v8, %v2647_v37  ;;  %v2001_v46 = vadd.f32 %v1937_v51, %v1316_v15 }
 0x152   : > { %v2518_v58 = vadd.f32 %v2454_v52, %v1999_v41  ;;  %v4414_v3 = vpop.f32.mrb[52].mxu0  ;;  %v2651_v38 = vmax.f32 %v2587_v13, 0.0  ;;  %v1588_v52 = vld [vmem:[%s3911_s15 + $0x190] sm:$0xff]  ;;  %v1319_v55 = vadd.f32 %v4112_v23, %v4333_v12  ;;  %v1940_v34 = vmul.f32 %v4280_v18, %v4214_v17 }
 0x153   : > { %v2650_v45 = vmax.f32 %v2586_v63, 0.0  ;;  %v2517_v43 = vadd.f32 %v2453_v49, %v1998_v40  ;;  %3569 = vmatprep.mubr.msk.bf16.mxu1 %vm1152_vm0, %v2711_v57  ;;  %v2165_v53 = vpop.permute.xlu1 %2164  ;;  %v2000_v40 = vadd.f32 %v1936_v62, %v1311_v21  ;;  %v4429_v25 = vpop.f32.mrb[53].mxu0  ;;  %v2003_v32 = vadd.f32 %v1939_v26, %v1324_v47 }
 0x154   : > { %v2160_v29 = vpop.permute.xlu0 %2159  ;;  %v2456_v30 = vmul.f32 %v4295_v48, %v2165_v53  ;;  %1850 = vperm.xlu1 %3643, %v1587_v33   ;;  %v4435_v1 = vpop.f32.mrb[54].mxu0  ;;  %v2589_v37 = vadd.f32 %v4350_v54, %v2518_v58  ;;  %v1941_v57 = vmul.f32 %v4280_v18, %v4224_v28  ;;  %v932_v17 = vmul.f32 %v4275_v36, %v3966_v6  ;;  %v2105_v53 = vld [vmem:[%s3986_s19 + $0x180] sm:$0xff] }
 0x155   : > { %v2588_v27 = vadd.f32 %v4350_v54, %v2517_v43  ;;  %v2455_v5 = vmul.f32 %v4295_v48, %v2160_v29  ;;  %1845 = vperm.xlu0 %3642, %v1586_v50   ;;  %v2712_v62 = vpack.c.bf16 %v2650_v45, %v2649_v42  ;;  %v4439_v63 = vpop.f32.mrb[55].mxu0  ;;  %v1327_v23 = vadd.f32 %v4108_v31, %v4356_v59  ;;  %v2106_v43 = vld [vmem:[%s3986_s19 + $0x188] sm:$0xff] }
 0x156   : > { %v2520_v49 = vadd.f32 %v2456_v30, %v2001_v46  ;;  %v2002_v12 = vadd.f32 %v1938_v7, %v1319_v55  ;;  %v1332_v28 = vadd.f32 %v4126_v19, %v4384_v11  ;;  %v2653_v50 = vmax.f32 %v2589_v37, 0.0  ;;  %v2107_v55 = vld [vmem:[%s3986_s19 + $0x190] sm:$0xff] }
 0x157   : > { %v2652_v8 = vmax.f32 %v2588_v27, 0.0  ;;  %v2519_v41 = vadd.f32 %v2455_v5, %v2000_v40  ;;  %3570 = vmatmul.mubr.msk.bf16.vlgmr.msra.gmra.mrb[0].mxu1 %vm1152_vm0, %v2712_v62  ;;  %v2175_v21 = vpop.permute.xlu1 %2174  ;;  %v2004_v6 = vadd.f32 %v1940_v34, %v1327_v23  ;;  %v1942_v31 = vmul.f32 %v4280_v18, %v4222_v44 }
 0x158   : > { %v2170_v51 = vpop.permute.xlu0 %2169  ;;  %v2458_v45 = vmul.f32 %v4295_v48, %v2175_v21  ;;  %1860 = vperm.xlu1 %3643, %v1589_v60   ;;  %v2591_v59 = vadd.f32 %v4350_v54, %v2520_v49  ;;  %v2005_v30 = vadd.f32 %v1941_v57, %v1332_v28  ;;  %v4472_v7 = vmul.f32 %v4275_v36, %v3970_v9 }
 0x159   : > { %v2713_v33 = vpack.c.bf16 %v2652_v8, %v2651_v38  ;;  %v2590_v13 = vadd.f32 %v4350_v54, %v2519_v41  ;;  %v2457_v58 = vmul.f32 %v4295_v48, %v2170_v51  ;;  %1855 = vperm.xlu0 %3642, %v1588_v52   ;;  %v934_v44 = vmul.f32 %v4275_v36, %v3972_v10  ;;  %v2108_v38 = vld [vmem:[%s3986_s19 + $0x198] sm:$0xff] }
 0x15a   : > { %v2522_v26 = vadd.f32 %v2458_v45, %v2003_v32  ;;  %v4459_v42 = vpop.f32.mrb[56].mxu0  ;;  %v1943_v46 = vmul.f32 %v4280_v18, %v4236_v14  ;;  %v1335_v37 = vadd.f32 %v4132_v16, %v4380_v4  ;;  %v1340_v10 = vadd.f32 %v4120_v0, %v4406_v35  ;;  %v5178_v14 = vld [vmem:[#allocation70_spill] sm:$0xff] }
 0x15b   : > { %v2654_v15 = vmax.f32 %v2590_v13, 0.0  ;;  %3573 = vmatprep.mubr.msk.bf16.mxu1 %vm1152_vm0, %v2713_v33  ;;  %v2521_v29 = vadd.f32 %v2457_v58, %v2002_v12  ;;  %v2185_v40 = vpop.permute.xlu1 %2184  ;;  %v4468_v47 = vpop.f32.mrb[57].mxu0  ;;  %v1945_v34 = vmul.f32 %v4280_v18, %v5178_v14  ;;  %v2655_v32 = vmax.f32 %v2591_v59, 0.0  ;;  %v5179_v0 = vld [vmem:[#allocation46_spill] sm:$0xff]  ;;  %v5180_v13 = vld [vmem:[#allocation67_spill] sm:$0xff]  ;;  %v5182_v59 = vld [vmem:[#allocation69_spill] sm:$0xff] }
 0x15c   : > { %v2180_v27 = vpop.permute.xlu0 %2179  ;;  %v2460_v11 = vmul.f32 %v4295_v48, %v2185_v40  ;;  %2369 = vperm.xlu1 %3643, %v2106_v43   ;;  %v4479_v60 = vpop.f32.mrb[58].mxu0  ;;  %v2593_v8 = vadd.f32 %v4350_v54, %v2522_v26  ;;  %v2006_v4 = vadd.f32 %v1942_v31, %v1335_v37  ;;  %v1348_v35 = vadd.f32 %v5179_v0, %v932_v17  ;;  %v1591_v58 = vld [vmem:[%s3911_s15 + $0x1a8] sm:$0xff]  ;;  %v1593_v14 = vld [vmem:[%s3911_s15 + $0x1b8] sm:$0xff] }
 0x15d   : > { %v2714_v19 = vpack.c.bf16 %v2654_v15, %v2653_v50  ;;  %v2459_v5 = vmul.f32 %v4295_v48, %v2180_v27  ;;  %v2592_v62 = vadd.f32 %v4350_v54, %v2521_v29  ;;  %2364 = vperm.xlu0 %3642, %v2105_v53   ;;  %v4485_v52 = vpop.f32.mrb[59].mxu0  ;;  %v1944_v45 = vmul.f32 %v4280_v18, %v5180_v13  ;;  %v1590_v53 = vld [vmem:[%s3911_s15 + $0x1a0] sm:$0xff] }
 0x15e   : > { %v2524_v41 = vadd.f32 %v2460_v11, %v2005_v30  ;;  %v2007_v23 = vadd.f32 %v1943_v46, %v1340_v10  ;;  %v2657_v43 = vmax.f32 %v2593_v8, 0.0  ;;  %v1946_v17 = vmul.f32 %v4280_v18, %v5182_v59  ;;  %v5185_v8 = vld [vmem:[#allocation48_spill] sm:$0xff]  ;;  %v2110_v59 = vld [vmem:[%s3986_s19 + $0x1a8] sm:$0xff] }
 0x15f   : > { %v2523_v9 = vadd.f32 %v2459_v5, %v2004_v6  ;;  %v2656_v49 = vmax.f32 %v2592_v62, 0.0  ;;  %3574 = vmatmul.mubr.msk.bf16.gmra.mrb[4].mxu1 %vm1152_vm0, %v2714_v19  ;;  %v2195_v21 = vpop.permute.xlu1 %2194  ;;  %v5181_v6 = vld [vmem:[#allocation40_spill] sm:$0xff]  ;;  %v2009_v29 = vadd.f32 %v1945_v34, %v1348_v35  ;;  %v5183_v19 = vld [vmem:[#allocation75_spill] sm:$0xff] }
 0x160   : > { %v2190_v16 = vpop.permute.xlu0 %2189  ;;  %v2462_v57 = vmul.f32 %v4295_v48, %v2195_v21  ;;  %2379 = vperm.xlu1 %3643, %v2108_v38   ;;  %v2595_v28 = vadd.f32 %v4350_v54, %v2524_v41  ;;  %v1343_v31 = vadd.f32 %v5181_v6, %v4388_v22  ;;  %v1947_v11 = vmul.f32 %v4280_v18, %v5183_v19  ;;  %v5184_v38 = vld [vmem:[#allocation2_spill] sm:$0xff]  ;;  %v5186_v34 = vld [vmem:[#allocation43_spill] sm:$0xff] }
 0x161   : > { %v2594_v51 = vadd.f32 %v4350_v54, %v2523_v9  ;;  %v2461_v33 = vmul.f32 %v4295_v48, %v2190_v16  ;;  %v2715_v12 = vpack.c.bf16 %v2656_v49, %v2655_v32  ;;  %2374 = vperm.xlu0 %3642, %v2107_v55   ;;  %v937_v37 = vmul.f32 %v4275_v36, %v5184_v38  ;;  %v2109_v19 = vld [vmem:[%s3986_s19 + $0x1a0] sm:$0xff] }
 0x162   : > { %v4501_v26 = vpop.f32.mrb[60].mxu0  ;;  %v2526_v40 = vadd.f32 %v2462_v57, %v2007_v23  ;;  %v1351_v41 = vadd.f32 %v5185_v8, %v4419_v2  ;;  %v2008_v9 = vadd.f32 %v1944_v45, %v1343_v31  ;;  %v1356_v32 = vadd.f32 %v5186_v34, %v934_v44 }
 0x163   : > { %v2658_v50 = vmax.f32 %v2594_v51, 0.0  ;;  %v2525_v15 = vadd.f32 %v2461_v33, %v2006_v4  ;;  %3577 = vmatprep.mubr.msk.bf16.mxu1 %vm1152_vm0, %v2715_v12  ;;  %v2205_v27 = vpop.permute.xlu1 %2204  ;;  %v4513_v22 = vpop.f32.mrb[61].mxu0  ;;  %v2659_v49 = vmax.f32 %v2595_v28, 0.0  ;;  %v1592_v51 = vld [vmem:[%s3911_s15 + $0x1b0] sm:$0xff]  ;;  %v5187_v33 = vld [vmem:[#allocation74_spill] sm:$0xff] }
 0x164   : > { %v2200_v30 = vpop.permute.xlu0 %2199  ;;  %v2464_v62 = vmul.f32 %v4295_v48, %v2205_v27  ;;  %1870 = vperm.xlu1 %3643, %v1591_v58   ;;  %v4520_v10 = vpop.f32.mrb[62].mxu0  ;;  %v2010_v57 = vadd.f32 %v1946_v17, %v1351_v41  ;;  %v1948_v0 = vmul.f32 %v4280_v18, %v5187_v33  ;;  %v2597_v2 = vadd.f32 %v4350_v54, %v2526_v40  ;;  %v5191_v17 = vld [vmem:[#allocation5_spill] sm:$0xff]  ;;  %v5193_v41 = vld [vmem:[#allocation83_spill] sm:$0xff] }
 0x165   : > { %v2716_v5 = vpack.c.bf16 %v2658_v50, %v2657_v43  ;;  %v2596_v46 = vadd.f32 %v4350_v54, %v2525_v15  ;;  %v2463_v55 = vmul.f32 %v4295_v48, %v2200_v30  ;;  %1865 = vperm.xlu0 %3642, %v1590_v53   ;;  %v4524_v4 = vpop.f32.mrb[63].mxu0  ;;  %v2011_v23 = vadd.f32 %v1947_v11, %v1356_v32  ;;  %v5188_v43 = vld [vmem:[#allocation3_spill] sm:$0xff]  ;;  %v5190_v53 = vld [vmem:[#allocation78_spill] sm:$0xff]  ;;  %v5192_v11 = vld [vmem:[#allocation52_spill] sm:$0xff] }
 0x166   : > { %v2528_v16 = vadd.f32 %v2464_v62, %v2009_v29  ;;  %v936_v28 = vmul.f32 %v4275_v36, %v5188_v43  ;;  %v5189_v50 = vld [vmem:[#allocation47_spill] sm:$0xff]  ;;  %v1949_v6 = vmul.f32 %v4280_v18, %v5190_v53  ;;  %v938_v29 = vmul.f32 %v4275_v36, %v5191_v17  ;;  %v2112_v33 = vld [vmem:[%s3986_s19 + $0x1b8] sm:$0xff]  ;;  %v5198_v43 = vld [vmem:[#allocation82_spill] sm:$0xff] }
 0x167   : > { %v2660_v21 = vmax.f32 %v2596_v46, 0.0  ;;  %v2527_v35 = vadd.f32 %v2463_v55, %v2008_v9  ;;  %3578 = vmatmul.mubr.msk.bf16.gmra.mrb[8].mxu1 %vm1152_vm0, %v2716_v5  ;;  %v2215_v13 = vpop.permute.xlu1 %2214  ;;  %v1359_v15 = vadd.f32 %v5189_v50, %v4472_v7  ;;  %v2661_v46 = vmax.f32 %v2597_v2, 0.0  ;;  %v5194_v32 = vld [vmem:[#allocation51_spill] sm:$0xff] }
 0x168   : > { %v2210_v45 = vpop.permute.xlu0 %2209  ;;  %v2466_v12 = vmul.f32 %v4295_v48, %v2215_v13  ;;  %1880 = vperm.xlu1 %3643, %v1593_v14   ;;  %v2599_v40 = vadd.f32 %v4350_v54, %v2528_v16  ;;  %v1364_v5 = vadd.f32 %v5192_v11, %v936_v28  ;;  %v1951_v9 = vmul.f32 %v4280_v18, %v5193_v41 }
 0x169   : > { %v2717_v44 = vpack.c.bf16 %v2660_v21, %v2659_v49  ;;  %v2465_v58 = vmul.f32 %v4295_v48, %v2210_v45  ;;  %v2598_v31 = vadd.f32 %v4350_v54, %v2527_v35  ;;  %1875 = vperm.xlu0 %3642, %v1592_v51   ;;  %v2012_v7 = vadd.f32 %v1948_v0, %v1359_v15  ;;  %v5195_v21 = vld [vmem:[#allocation77_spill] sm:$0xff]  ;;  %v2111_v45 = vld [vmem:[%s3986_s19 + $0x1b0] sm:$0xff] }
 0x16a   : > { %v2530_v27 = vadd.f32 %v2466_v12, %v2011_v23  ;;  %v1372_v49 = vadd.f32 %v5194_v32, %v938_v29  ;;  %v1950_v16 = vmul.f32 %v4280_v18, %v5195_v21  ;;  %v2013_v51 = vadd.f32 %v1949_v6, %v1364_v5  ;;  %v5196_v23 = vld [vmem:[#allocation4_spill] sm:$0xff]  ;;  %v5197_v12 = vld [vmem:[#allocation54_spill] sm:$0xff] }
 0x16b   : > { %v2529_v30 = vadd.f32 %v2465_v58, %v2010_v57  ;;  %3581 = vmatprep.mubr.msk.bf16.mxu1 %vm1152_vm0, %v2717_v44  ;;  %v2662_v62 = vmax.f32 %v2598_v31, 0.0  ;;  %v2225_v38 = vpop.permute.xlu1 %2224  ;;  %v2663_v0 = vmax.f32 %v2599_v40, 0.0  ;;  %v939_v44 = vmul.f32 %v4275_v36, %v5196_v23  ;;  %v1596_v21 = vld [vmem:[%s3911_s15 + $0x1d0] sm:$0xff] }
 0x16c   : > { %v2220_v8 = vpop.permute.xlu0 %2219  ;;  %v2468_v14 = vmul.f32 %v4295_v48, %v2225_v38  ;;  %2389 = vperm.xlu1 %3643, %v2110_v59   ;;  %v2601_v2 = vadd.f32 %v4350_v54, %v2530_v27  ;;  %v1367_v58 = vadd.f32 %v5197_v12, %v937_v37  ;;  %v1952_v28 = vmul.f32 %v4280_v18, %v5198_v43  ;;  %v1595_v37 = vld [vmem:[%s3911_s15 + $0x1c8] sm:$0xff]  ;;  %v5199_v27 = vld [vmem:[#allocation53_spill] sm:$0xff] }
 0x16d   : > { %v2600_v55 = vadd.f32 %v4350_v54, %v2529_v30  ;;  %v2467_v34 = vmul.f32 %v4295_v48, %v2220_v8  ;;  %v2718_v57 = vpack.c.bf16 %v2662_v62, %v2661_v46  ;;  %2384 = vperm.xlu0 %3642, %v2109_v19   ;;  %v2015_v6 = vadd.f32 %v1951_v9, %v1372_v49 }
 0x16e   : > { %v2532_v50 = vadd.f32 %v2468_v14, %v2013_v51  ;;  %v2014_v29 = vadd.f32 %v1950_v16, %v1367_v58  ;;  %v1375_v30 = vadd.f32 %v5199_v27, %v939_v44  ;;  %v2665_v19 = vmax.f32 %v2601_v2, 0.0  ;;  %v5200_v16 = vld [vmem:[#allocation7_spill] sm:$0xff]  ;;  %v5203_v58 = vld [vmem:[#allocation56_spill] sm:$0xff] }
 0x16f   : > { %v2664_v35 = vmax.f32 %v2600_v55, 0.0  ;;  %v2531_v13 = vadd.f32 %v2467_v34, %v2012_v7  ;;  %3582 = vmatmul.mubr.msk.bf16.gmra.mrb[12].mxu1 %vm1152_vm0, %v2718_v57  ;;  %v2235_v15 = vpop.permute.xlu1 %2234  ;;  %v1594_v7 = vld [vmem:[%s3911_s15 + $0x1c0] sm:$0xff]  ;;  %v1597_v34 = vld [vmem:[%s3911_s15 + $0x1d8] sm:$0xff]  ;;  %v940_v51 = vmul.f32 %v4275_v36, %v5200_v16 }
 0x170   : > { %v2230_v53 = vpop.permute.xlu0 %2229  ;;  %v2470_v17 = vmul.f32 %v4295_v48, %v2235_v15  ;;  %2399 = vperm.xlu1 %3643, %v2112_v33   ;;  %v2603_v46 = vadd.f32 %v4350_v54, %v2532_v50  ;;  %v2016_v41 = vadd.f32 %v1952_v28, %v1375_v30  ;;  %v5201_v57 = vld [vmem:[#allocation85_spill] sm:$0xff]  ;;  %v2114_v50 = vld [vmem:[%s3986_s19 + $0x1c8] sm:$0xff]  ;;  %v5204_v15 = vld [vmem:[#allocation8_spill] sm:$0xff] }
 0x171   : > { %v2719_v31 = vpack.c.bf16 %v2664_v35, %v2663_v0  ;;  %v2602_v59 = vadd.f32 %v4350_v54, %v2531_v13  ;;  %v2469_v40 = vmul.f32 %v4295_v48, %v2230_v53  ;;  %2394 = vperm.xlu0 %3642, %v2111_v45   ;;  %v1953_v33 = vmul.f32 %v4280_v18, %v5201_v57  ;;  %v5202_v45 = vld [vmem:[#allocation6_spill] sm:$0xff] }
 0x172   : > { %v2534_v5 = vadd.f32 %v2470_v17, %v2015_v6  ;;  %v2667_v0 = vmax.f32 %v2603_v46, 0.0  ;;  %v941_v23 = vmul.f32 %v4275_v36, %v5202_v45  ;;  %v1380_v43 = vadd.f32 %v5203_v58, %v940_v51  ;;  %v5205_v6 = vld [vmem:[#allocation58_spill] sm:$0xff] }
 0x173   : > { %v2666_v11 = vmax.f32 %v2602_v59, 0.0  ;;  %3585 = vmatprep.mubr.msk.bf16.mxu1 %vm1152_vm0, %v2719_v31  ;;  %v2533_v62 = vadd.f32 %v2469_v40, %v2014_v29  ;;  %v1731_v38 = vpop.permute.xlu1 %1730  ;;  %v943_v53 = vmul.f32 %v4275_v36, %v5204_v15  ;;  %v2113_v29 = vld [vmem:[%s3986_s19 + $0x1c0] sm:$0xff]  ;;  %v5206_v40 = vld [vmem:[#allocation9_spill] sm:$0xff] }
 0x174   : > { %v2240_v8 = vpop.permute.xlu0 %2239  ;;  %1890 = vperm.xlu1 %3643, %v1595_v37   ;;  %v2605_v32 = vadd.f32 %v4350_v54, %v2534_v5  ;;  %v1954_v44 = vmul.f32 %v4280_v18, %v1731_v38  ;;  %v1383_v31 = vadd.f32 %v5205_v6, %v941_v23  ;;  %v942_v37 = vmul.f32 %v4275_v36, %v5206_v40  ;;  %v1598_v58 = vld [vmem:[%s3911_s15 + $0x1e0] sm:$0xff]  ;;  %v1601_v6 = vld [vmem:[%s3911_s15 + $0x1f8] sm:$0xff] }
 0x175   : > { %v2720_v9 = vpack.c.bf16 %v2666_v11, %v2665_v19  ;;  %v2471_v55 = vmul.f32 %v4295_v48, %v2240_v8  ;;  %v2604_v14 = vadd.f32 %v4350_v54, %v2533_v62  ;;  %1885 = vperm.xlu0 %3642, %v1594_v7   ;;  %v2017_v27 = vadd.f32 %v1953_v33, %v1380_v43  ;;  %v5207_v8 = vld [vmem:[#allocation55_spill] sm:$0xff] }
 0x176   : > { %v2669_v59 = vmax.f32 %v2605_v32, 0.0  ;;  %v2018_v7 = vadd.f32 %v1954_v44, %v1383_v31 }
 0x177   : > { %v2535_v49 = vadd.f32 %v2471_v55, %v2016_v41  ;;  %v2668_v2 = vmax.f32 %v2604_v14, 0.0  ;;  %3586 = vmatmul.mubr.msk.bf16.gmra.mrb[16].mxu1 %vm1152_vm0, %v2720_v9  ;;  %v1741_v35 = vpop.permute.xlu1 %1740  ;;  %v1388_v41 = vadd.f32 %v5207_v8, %v942_v37  ;;  %v5208_v9 = vld [vmem:[#allocation57_spill] sm:$0xff]  ;;  %v5212_v8 = vld [vmem:[#allocation62_spill] sm:$0xff] }
 0x178   : > { %v1736_v13 = vpop.permute.xlu0 %1735  ;;  %1900 = vperm.xlu1 %3643, %v1597_v34   ;;  %v1956_v30 = vmul.f32 %v4280_v18, %v1741_v35  ;;  %v1391_v55 = vadd.f32 %v5208_v9, %v943_v53  ;;  %v2116_v14 = vld [vmem:[%s3986_s19 + $0x1d8] sm:$0xff]  ;;  %v2117_v9 = vld [vmem:[%s3986_s19 + $0x1e0] sm:$0xff] }
 0x179   : > { %v2606_v12 = vadd.f32 %v4350_v54, %v2535_v49  ;;  %v2721_v28 = vpack.c.bf16 %v2668_v2, %v2667_v0  ;;  %1895 = vperm.xlu0 %3642, %v1596_v21   ;;  %v1955_v19 = vmul.f32 %v4280_v18, %v1736_v13  ;;  %v2115_v49 = vld [vmem:[%s3986_s19 + $0x1d0] sm:$0xff]  ;;  %v1599_v13 = vld [vmem:[%s3911_s15 + $0x1e8] sm:$0xff] }
 0x17a   : > { %v2020_v21 = vadd.f32 %v1956_v30, %v1391_v55  ;;  %v5210_v30 = vld [vmem:[#allocation11_spill] sm:$0xff]  ;;  %v5213_v55 = vld [vmem:[#allocation12_spill] sm:$0xff] }
 0x17b   : > { %v2670_v17 = vmax.f32 %v2606_v12, 0.0  ;;  %3589 = vmatprep.mubr.msk.bf16.mxu1 %vm1152_vm0, %v2721_v28  ;;  %v2250_v11 = vpop.permute.xlu1 %2249  ;;  %v2019_v16 = vadd.f32 %v1955_v19, %v1388_v41  ;;  %v944_v19 = vmul.f32 %v4275_v36, %v5210_v30 }
 0x17c   : > { %v2245_v5 = vpop.permute.xlu0 %2244  ;;  %v2473_v62 = vmul.f32 %v4295_v48, %v2250_v11  ;;  %2409 = vperm.xlu1 %3643, %v2114_v50  }
 0x17d   : > { %v2722_v46 = vpack.c.bf16 %v2670_v17, %v2669_v59  ;;  %v2472_v38 = vmul.f32 %v4295_v48, %v2245_v5  ;;  %2404 = vperm.xlu0 %3642, %v2113_v29   ;;  %v1600_v17 = vld [vmem:[%s3911_s15 + $0x1f0] sm:$0xff]  ;;  %v5209_v29 = vld [vmem:[#allocation10_spill] sm:$0xff] }
 0x17e   : > { %v2537_v34 = vadd.f32 %v2473_v62, %v2018_v7  ;;  %v945_v40 = vmul.f32 %v4275_v36, %v5209_v29  ;;  %v5211_v62 = vld [vmem:[#allocation60_spill] sm:$0xff] }
 0x17f   : > { %v2536_v32 = vadd.f32 %v2472_v38, %v2017_v27  ;;  %3590 = vmatmul.mubr.msk.bf16.gmra.mrb[20].mxu1 %vm1152_vm0, %v2722_v46  ;;  %v2260_v51 = vpop.permute.xlu1 %2259  ;;  %v2118_v46 = vld [vmem:[%s3986_s19 + $0x1e8] sm:$0xff]  ;;  %v1396_v38 = vadd.f32 %v5211_v62, %v944_v19 }
 0x180   : > { %v2255_v57 = vpop.permute.xlu0 %2254  ;;  %v2608_v33 = vadd.f32 %v4350_v54, %v2537_v34  ;;  %v2475_v2 = vmul.f32 %v4295_v48, %v2260_v51  ;;  %2419 = vperm.xlu1 %3643, %v2116_v14   ;;  %v1399_v41 = vadd.f32 %v5212_v8, %v945_v40  ;;  %v947_v14 = vmul.f32 %v4275_v36, %v5213_v55  ;;  %v5214_v34 = vld [vmem:[#allocation13_spill] sm:$0xff]  ;;  %v5218_v55 = vld [vmem:[#allocation15_spill] sm:$0xff] }
 0x181   : > { %v2607_v0 = vadd.f32 %v4350_v54, %v2536_v32  ;;  %v2474_v35 = vmul.f32 %v4295_v48, %v2255_v57  ;;  %2414 = vperm.xlu0 %3642, %v2115_v49   ;;  %v946_v32 = vmul.f32 %v4275_v36, %v5214_v34 }
 0x182   : > { %v2672_v45 = vmax.f32 %v2608_v33, 0.0  ;;  %v2539_v44 = vadd.f32 %v2475_v2, %v2020_v21 }
 0x183   : > { %v2671_v23 = vmax.f32 %v2607_v0, 0.0  ;;  %v2538_v12 = vadd.f32 %v2474_v35, %v2019_v16  ;;  %v1751_v43 = vpop.permute.xlu1 %1750  ;;  %v5215_v35 = vld [vmem:[#allocation59_spill] sm:$0xff] }
 0x184   : > { %v1746_v28 = vpop.permute.xlu0 %1745  ;;  %v2610_v15 = vadd.f32 %v4350_v54, %v2539_v44  ;;  %1910 = vperm.xlu1 %3643, %v1599_v13   ;;  %v1958_v5 = vmul.f32 %v4280_v18, %v1751_v43  ;;  %v1404_v13 = vadd.f32 %v5215_v35, %v946_v32  ;;  %v2120_v44 = vld [vmem:[%s3986_s19 + $0x1f8] sm:$0xff]  ;;  %v2119_v43 = vld [vmem:[%s3986_s19 + $0x1f0] sm:$0xff] }
 0x185   : > { %v2723_v50 = vpack.c.bf16 %v2672_v45, %v2671_v23  ;;  %v2609_v53 = vadd.f32 %v4350_v54, %v2538_v12  ;;  %1905 = vperm.xlu0 %3642, %v1598_v58   ;;  %v1957_v7 = vmul.f32 %v4280_v18, %v1746_v28  ;;  %v5216_v45 = vld [vmem:[#allocation61_spill] sm:$0xff] }
 0x186   : > { %v2674_v31 = vmax.f32 %v2610_v15, 0.0  ;;  %v2022_v57 = vadd.f32 %v1958_v5, %v1399_v41  ;;  %v1407_v23 = vadd.f32 %v5216_v45, %v947_v14  ;;  %v948_v14 = vmul.f32 %v4275_v36, %v5218_v55 }
 0x187   : > { %v2673_v59 = vmax.f32 %v2609_v53, 0.0  ;;  %3593 = vmatprep.mubr.msk.bf16.mxu1 %vm1152_vm0, %v2723_v50  ;;  %v1761_v37 = vpop.permute.xlu1 %1760  ;;  %v2021_v33 = vadd.f32 %v1957_v7, %v1396_v38  ;;  %v5217_v38 = vld [vmem:[#allocation14_spill] sm:$0xff] }
 0x188   : > { %v1756_v27 = vpop.permute.xlu0 %1755  ;;  %1920 = vperm.xlu1 %3643, %v1601_v6   ;;  %v1960_v49 = vmul.f32 %v4280_v18, %v1761_v37  ;;  %v949_v8 = vmul.f32 %v4275_v36, %v5217_v38 }
 0x189   : > { %v2724_v11 = vpack.c.bf16 %v2674_v31, %v2673_v59  ;;  %1915 = vperm.xlu0 %3642, %v1600_v17   ;;  %v1959_v21 = vmul.f32 %v4280_v18, %v1756_v27 }
 0x18a   : > { %v2024_v28 = vadd.f32 %v1960_v49, %v1407_v23 }
 0x18b   : > { %3594 = vmatmul.mubr.msk.bf16.gmra.mrb[24].mxu1 %vm1152_vm0, %v2724_v11  ;;  %v2270_v16 = vpop.permute.xlu1 %2269  ;;  %v2023_v50 = vadd.f32 %v1959_v21, %v1404_v13  ;;  %v5219_v21 = vld [vmem:[#allocation64_spill] sm:$0xff] }
 0x18c   : > { %v2265_v51 = vpop.permute.xlu0 %2264  ;;  %v2477_v0 = vmul.f32 %v4295_v48, %v2270_v16  ;;  %2429 = vperm.xlu1 %3643, %v2118_v46   ;;  %v1412_v16 = vadd.f32 %v5219_v21, %v948_v14 }
 0x18d   : > { %v2476_v2 = vmul.f32 %v4295_v48, %v2265_v51  ;;  %2424 = vperm.xlu0 %3642, %v2117_v9   ;;  %v5220_v51 = vld [vmem:[#allocation66_spill] sm:$0xff] }
 0x18e   : > { %v2541_v12 = vadd.f32 %v2477_v0, %v2022_v57  ;;  %v1415_v57 = vadd.f32 %v5220_v51, %v949_v8  ;;  %v5226_v51 = vld [vmem:[#allocation19_spill] sm:$0xff] }
 0x18f   : > { %v2540_v58 = vadd.f32 %v2476_v2, %v2021_v33  ;;  %v2280_v15 = vpop.permute.xlu1 %2279  ;;  %v5221_v33 = vld [vmem:[#allocation16_spill] sm:$0xff]  ;;  %v5222_v2 = vld [vmem:[#allocation17_spill] sm:$0xff] }
 0x190   : > { %v2275_v53 = vpop.permute.xlu0 %2274  ;;  %v2612_v6 = vadd.f32 %v4350_v54, %v2541_v12  ;;  %v2479_v59 = vmul.f32 %v4295_v48, %v2280_v15  ;;  %2439 = vperm.xlu1 %3643, %v2120_v44   ;;  %v951_v0 = vmul.f32 %v4275_v36, %v5221_v33  ;;  %v950_v35 = vmul.f32 %v4275_v36, %v5222_v2 }
 0x191   : > { %v2611_v31 = vadd.f32 %v4350_v54, %v2540_v58  ;;  %v2478_v17 = vmul.f32 %v4295_v48, %v2275_v53  ;;  %2434 = vperm.xlu0 %3642, %v2119_v43   ;;  %v5224_v53 = vld [vmem:[#allocation65_spill] sm:$0xff] }
 0x192   : > { %v2676_v29 = vmax.f32 %v2612_v6, 0.0  ;;  %v2543_v37 = vadd.f32 %v2479_v59, %v2024_v28  ;;  %v1423_v6 = vadd.f32 %v5224_v53, %v951_v0 }
 0x193   : > { %v2675_v40 = vmax.f32 %v2611_v31, 0.0  ;;  %v2542_v27 = vadd.f32 %v2478_v17, %v2023_v50  ;;  %v1771_v30 = vpop.permute.xlu1 %1770  ;;  %v5223_v50 = vld [vmem:[#allocation63_spill] sm:$0xff] }
 0x194   : > { %v1766_v19 = vpop.permute.xlu0 %1765  ;;  %v2614_v5 = vadd.f32 %v4350_v54, %v2543_v37  ;;  %v1962_v32 = vmul.f32 %v4280_v18, %v1771_v30  ;;  %v1420_v15 = vadd.f32 %v5223_v50, %v950_v35  ;;  %v5227_v35 = vld [vmem:[#allocation71_spill] sm:$0xff] }
 0x195   : > { %v2725_v11 = vpack.c.bf16 %v2676_v29, %v2675_v40  ;;  %v2613_v7 = vadd.f32 %v4350_v54, %v2542_v27  ;;  %v1961_v49 = vmul.f32 %v4280_v18, %v1766_v19 }
 0x196   : > { %v2678_v46 = vmax.f32 %v2614_v5, 0.0  ;;  %v2026_v12 = vadd.f32 %v1962_v32, %v1415_v57  ;;  %v5225_v32 = vld [vmem:[#allocation18_spill] sm:$0xff]  ;;  %v952_v57 = vmul.f32 %v4275_v36, %v5226_v51 }
 0x197   : > { %v2677_v62 = vmax.f32 %v2613_v7, 0.0  ;;  %3597 = vmatprep.mubr.msk.bf16.mxu1 %vm1152_vm0, %v2725_v11  ;;  %v1781_v41 = vpop.permute.xlu1 %1780  ;;  %v2025_v58 = vadd.f32 %v1961_v49, %v1412_v16  ;;  %v953_v49 = vmul.f32 %v4275_v36, %v5225_v32 }
 0x198   : > { %v1776_v9 = vpop.permute.xlu0 %1775  ;;  %v1964_v13 = vmul.f32 %v4280_v18, %v1781_v41 }
 0x199   : > { %v2726_v34 = vpack.c.bf16 %v2678_v46, %v2677_v62  ;;  %v1963_v45 = vmul.f32 %v4280_v18, %v1776_v9 }
 0x19a   : > { %v2028_v17 = vadd.f32 %v1964_v13, %v1423_v6  ;;  %v1428_v13 = vadd.f32 %v5227_v35, %v952_v57  ;;  %v4700_v57 = vld [vmem:[%s5085_s5] ss:$0 sm:$0xff]  ;;  %v5234_v35 = vld [vmem:[#allocation23_spill] sm:$0xff] }
 0x19b   : > { %3598 = vmatmul.mubr.msk.bf16.gmra.mrb[28].mxu1 %vm1152_vm0, %v2726_v34  ;;  %v2290_v23 = vpop.permute.xlu1 %2289  ;;  %v2027_v29 = vadd.f32 %v1963_v45, %v1420_v15  ;;  %v5228_v45 = vld [vmem:[#allocation73_spill] sm:$0xff] }
 0x19c   : > { %v2285_v44 = vpop.permute.xlu0 %2284  ;;  %v2481_v43 = vmul.f32 %v4295_v48, %v2290_v23  ;;  %v1431_v23 = vadd.f32 %v5228_v45, %v953_v49 }
 0x19d   : > { %v2480_v28 = vmul.f32 %v4295_v48, %v2285_v44  ;;  %v5229_v44 = vld [vmem:[#allocation20_spill] sm:$0xff] }
 0x19e   : > { %v2545_v31 = vadd.f32 %v2481_v43, %v2026_v12  ;;  %v955_v12 = vmul.f32 %v4275_v36, %v5229_v44 }
 0x19f   : > { %v2544_v59 = vadd.f32 %v2480_v28, %v2025_v58  ;;  %v2300_v40 = vpop.permute.xlu1 %2299  ;;  %v5230_v58 = vld [vmem:[#allocation21_spill] sm:$0xff] }
 0x1a0   : > { %v2295_v37 = vpop.permute.xlu0 %2294  ;;  %v2616_v27 = vadd.f32 %v4350_v54, %v2545_v31  ;;  %v2483_v19 = vmul.f32 %v4295_v48, %v2300_v40  ;;  %v954_v43 = vmul.f32 %v4275_v36, %v5230_v58  ;;  %v5235_v58 = vld [vmem:[#allocation79_spill] sm:$0xff] }
 0x1a1   : > { %v2615_v30 = vadd.f32 %v4350_v54, %v2544_v59  ;;  %v2482_v11 = vmul.f32 %v4295_v48, %v2295_v37  ;;  %v5232_v37 = vld [vmem:[#allocation72_spill] sm:$0xff] }
 0x1a2   : > { %v2680_v5 = vmax.f32 %v2616_v27, 0.0  ;;  %v2547_v46 = vadd.f32 %v2483_v19, %v2028_v17  ;;  %v1439_v27 = vadd.f32 %v5232_v37, %v955_v12 }
 0x1a3   : > { %v2679_v7 = vmax.f32 %v2615_v30, 0.0  ;;  %v2546_v62 = vadd.f32 %v2482_v11, %v2027_v29  ;;  %v1791_v38 = vpop.permute.xlu1 %1790  ;;  %v5231_v29 = vld [vmem:[#allocation68_spill] sm:$0xff] }
 0x1a4   : > { %v1786_v8 = vpop.permute.xlu0 %1785  ;;  %v2618_v9 = vadd.f32 %v4350_v54, %v2547_v46  ;;  %v1966_v0 = vmul.f32 %v4280_v18, %v1791_v38  ;;  %v1436_v40 = vadd.f32 %v5231_v29, %v954_v43 }
 0x1a5   : > { %v2727_v41 = vpack.c.bf16 %v2680_v5, %v2679_v7  ;;  %v2617_v55 = vadd.f32 %v4350_v54, %v2546_v62  ;;  %v1965_v2 = vmul.f32 %v4280_v18, %v1786_v8 }
 0x1a6   : > { %v2682_v14 = vmax.f32 %v2618_v9, 0.0  ;;  %v2030_v6 = vadd.f32 %v1966_v0, %v1431_v23  ;;  %v4709_v23 = vld [vmem:[%s5086_s6] ss:$0 sm:$0xff] }
 0x1a7   : > { %v2681_v34 = vmax.f32 %v2617_v55, 0.0  ;;  %3601 = vmatprep.mubr.msk.bf16.mxu1 %vm1152_vm0, %v2727_v41  ;;  %v1801_v21 = vpop.permute.xlu1 %1800  ;;  %v2029_v31 = vadd.f32 %v1965_v2, %v1428_v13  ;;  %v956_v13 = vmul.f32 %v4700_v57, %v5234_v35 }
 0x1a8   : > { %v1796_v16 = vpop.permute.xlu0 %1795  ;;  %v1968_v28 = vmul.f32 %v4280_v18, %v1801_v21 }
 0x1a9   : > { %v2728_v33 = vpack.c.bf16 %v2682_v14, %v2681_v34  ;;  %v1967_v50 = vmul.f32 %v4280_v18, %v1796_v16  ;;  %v1444_v43 = vadd.f32 %v5235_v58, %v956_v13 }
 0x1aa   : > { %v2032_v11 = vadd.f32 %v1968_v28, %v1439_v27  ;;  %v5236_v28 = vld [vmem:[#allocation81_spill] sm:$0xff] }
 0x1ab   : > { %3602 = vmatmul.mubr.msk.bf16.gmra.mrb[32].mxu1 %vm1152_vm0, %v2728_v33  ;;  %v2310_v15 = vpop.permute.xlu1 %2309  ;;  %v2031_v36 = vadd.f32 %v1967_v50, %v1436_v40 }
 0x1ac   : > { %v2305_v53 = vpop.permute.xlu0 %2304  ;;  %v2485_v59 = vmul.f32 %v4295_v48, %v2310_v15  ;;  %v5237_v15 = vld [vmem:[#allocation24_spill] sm:$0xff] }
 0x1ad   : > { %v2484_v17 = vmul.f32 %v4295_v48, %v2305_v53  ;;  %v959_v53 = vmul.f32 %v4700_v57, %v5237_v15 }
 0x1ae   : > { %v2549_v30 = vadd.f32 %v2485_v59, %v2030_v6  ;;  %v5238_v6 = vld [vmem:[#allocation25_spill] sm:$0xff] }
 0x1af   : > { %v2548_v19 = vadd.f32 %v2484_v17, %v2029_v31  ;;  %v2320_v5 = vpop.permute.xlu1 %2319  ;;  %v958_v31 = vmul.f32 %v4700_v57, %v5238_v6 }
 0x1b0   : > { %v2315_v7 = vpop.permute.xlu0 %2314  ;;  %v2620_v18 = vadd.f32 %v4350_v54, %v2549_v30  ;;  %v2487_v62 = vmul.f32 %v4295_v48, %v2320_v5  ;;  %v4725_v30 = vld [vmem:[%s5087_s7] ss:$0 sm:$0xff] }
 0x1b1   : > { %v2619_v46 = vadd.f32 %v4350_v54, %v2548_v19  ;;  %v2486_v38 = vmul.f32 %v4295_v48, %v2315_v7  ;;  %v5233_v48 = vld [vmem:[#allocation22_spill] sm:$0xff]  ;;  %v5240_v7 = vld [vmem:[#allocation80_spill] sm:$0xff] }
 0x1b2   : > { %v2684_v8 = vmax.f32 %v2620_v18, 0.0  ;;  %v2551_v9 = vadd.f32 %v2487_v62, %v2032_v11  ;;  %v957_v33 = vmul.f32 %v4700_v57, %v5233_v48  ;;  %v1455_v18 = vadd.f32 %v5240_v7, %v959_v53 }
 0x1b3   : > { %v2683_v41 = vmax.f32 %v2619_v46, 0.0  ;;  %v2550_v55 = vadd.f32 %v2486_v38, %v2031_v36  ;;  %v1811_v14 = vpop.permute.xlu1 %1810  ;;  %v5239_v36 = vld [vmem:[#allocation76_spill] sm:$0xff] }
 0x1b4   : > { %v1806_v34 = vpop.permute.xlu0 %1805  ;;  %v2622_v49 = vadd.f32 %v4350_v54, %v2551_v9  ;;  %v1970_v44 = vmul.f32 %v4709_v23, %v1811_v14  ;;  %v1447_v50 = vadd.f32 %v5236_v28, %v957_v33  ;;  %v1452_v5 = vadd.f32 %v5239_v36, %v958_v31 }
 0x1b5   : > { %v2729_v32 = vpack.c.bf16 %v2684_v8, %v2683_v41  ;;  %v2621_v21 = vadd.f32 %v4350_v54, %v2550_v55  ;;  %v1969_v12 = vmul.f32 %v4709_v23, %v1806_v34 }
 0x1b6   : > { %v2686_v16 = vmax.f32 %v2622_v49, 0.0  ;;  %v2034_v37 = vadd.f32 %v1970_v44, %v1447_v50  ;;  %v5241_v44 = vld [vmem:[#allocation26_spill] sm:$0xff]  ;;  %v5242_v50 = vld [vmem:[#allocation27_spill] sm:$0xff] }
 0x1b7   : > { %v2685_v51 = vmax.f32 %v2621_v21, 0.0  ;;  %3605 = vmatprep.mubr.msk.bf16.mxu1 %vm1152_vm0, %v2729_v32  ;;  %v1821_v0 = vpop.permute.xlu1 %1820  ;;  %v2033_v27 = vadd.f32 %v1969_v12, %v1444_v43  ;;  %v961_v12 = vmul.f32 %v4700_v57, %v5241_v44  ;;  %v960_v15 = vmul.f32 %v4700_v57, %v5242_v50 }
 0x1b8   : > { %v1816_v2 = vpop.permute.xlu0 %1815  ;;  %v1972_v59 = vmul.f32 %v4709_v23, %v1821_v0 }
 0x1b9   : > { %v2730_v45 = vpack.c.bf16 %v2686_v16, %v2685_v51  ;;  %v1971_v17 = vmul.f32 %v4709_v23, %v1816_v2  ;;  %v4738_v2 = vld [vmem:[%s5088_s8] ss:$0 sm:$0xff]  ;;  %v1463_v31 = vadd.f32 %v4340_v39, %v961_v12 }
 0x1ba   : > { %v2036_v38 = vadd.f32 %v1972_v59, %v1455_v18  ;;  %v5243_v59 = vld [vmem:[#allocation86_spill] sm:$0xff]  ;;  %v5245_v18 = vld [vmem:[#allocation29_spill] sm:$0xff] }
 0x1bb   : > { %3606 = vmatmul.mubr.msk.bf16.gmra.mrb[36].mxu1 %vm1152_vm0, %v2730_v45  ;;  %v2330_v29 = vpop.permute.xlu1 %2329  ;;  %v2035_v8 = vadd.f32 %v1971_v17, %v1452_v5  ;;  %v1460_v17 = vadd.f32 %v5243_v59, %v960_v15  ;;  %v962_v39 = vmul.f32 %v4700_v57, %v5245_v18  ;;  %v5248_v15 = vld [vmem:[#allocation30_spill] sm:$0xff]  ;;  %v5249_v59 = vld [vmem:[#allocation31_spill] sm:$0xff] }
 0x1bc   : > { %v2325_v40 = vpop.permute.xlu0 %2324  ;;  %v2489_v19 = vmul.f32 %v4725_v30, %v2330_v29  ;;  %v5244_v29 = vld [vmem:[#allocation28_spill] sm:$0xff] }
 0x1bd   : > { %v2488_v11 = vmul.f32 %v4725_v30, %v2325_v40  ;;  %v963_v40 = vmul.f32 %v4700_v57, %v5244_v29 }
 0x1be   : > { %v2553_v46 = vadd.f32 %v2489_v19, %v2034_v37 }
 0x1bf   : > { %v2552_v62 = vadd.f32 %v2488_v11, %v2033_v27  ;;  %v2340_v41 = vpop.permute.xlu1 %2339 }
 0x1c0   : > { %v2335_v9 = vpop.permute.xlu0 %2334  ;;  %v2624_v55 = vadd.f32 %v4350_v54, %v2553_v46  ;;  %v2491_v34 = vmul.f32 %v4725_v30, %v2340_v41 }
 0x1c1   : > { %v2623_v14 = vadd.f32 %v4350_v54, %v2552_v62  ;;  %v2490_v32 = vmul.f32 %v4725_v30, %v2335_v9  ;;  %v5246_v62 = vld [vmem:[#allocation87_spill] sm:$0xff]  ;;  %v5247_v9 = vld [vmem:[#allocation84_spill] sm:$0xff] }
 0x1c2   : > { %v2688_v49 = vmax.f32 %v2624_v55, 0.0  ;;  %v2555_v16 = vadd.f32 %v2491_v34, %v2036_v38  ;;  %v1471_v38 = vadd.f32 %v5246_v62, %v963_v40  ;;  %v1468_v55 = vadd.f32 %v5247_v9, %v962_v39 }
 0x1c3   : > { %v2687_v21 = vmax.f32 %v2623_v14, 0.0  ;;  %v2554_v51 = vadd.f32 %v2490_v32, %v2035_v8  ;;  %v1831_v48 = vpop.permute.xlu1 %1830 }
 0x1c4   : > { %v1826_v33 = vpop.permute.xlu0 %1825  ;;  %v2626_v35 = vadd.f32 %v4738_v2, %v2555_v16  ;;  %v1974_v58 = vmul.f32 %v4709_v23, %v1831_v48 }
 0x1c5   : > { %v2731_v0 = vpack.c.bf16 %v2688_v49, %v2687_v21  ;;  %v2625_v54 = vadd.f32 %v4738_v2, %v2554_v51  ;;  %v1973_v6 = vmul.f32 %v4709_v23, %v1826_v33 }
 0x1c6   : > { %v2690_v13 = vmax.f32 %v2626_v35, 0.0  ;;  %v2038_v37 = vadd.f32 %v1974_v58, %v1463_v31 }
 0x1c7   : > { %v2689_v45 = vmax.f32 %v2625_v54, 0.0  ;;  %3609 = vmatprep.mubr.msk.bf16.mxu1 %vm1152_vm0, %v2731_v0  ;;  %v1841_v43 = vpop.permute.xlu1 %1840  ;;  %v2037_v11 = vadd.f32 %v1973_v6, %v1460_v17  ;;  %v964_v17 = vmul.f32 %v4700_v57, %v5249_v59 }
 0x1c8   : > { %v1836_v28 = vpop.permute.xlu0 %1835  ;;  %v1976_v36 = vmul.f32 %v4709_v23, %v1841_v43 }
 0x1c9   : > { %v2732_v53 = vpack.c.bf16 %v2690_v13, %v2689_v45  ;;  %v1975_v46 = vmul.f32 %v4709_v23, %v1836_v28 }
 0x1ca   : > { %v2040_v34 = vadd.f32 %v1976_v36, %v1471_v38 }
 0x1cb   : > { %3610 = vmatmul.mubr.msk.bf16.gmra.mrb[40].mxu1 %vm1152_vm0, %v2732_v53  ;;  %v2350_v27 = vpop.permute.xlu1 %2349  ;;  %v2039_v51 = vadd.f32 %v1975_v46, %v1468_v55  ;;  %v965_v53 = vmul.f32 %v4700_v57, %v5248_v15  ;;  %v5251_v46 = vld [vmem:[#allocation33_spill] sm:$0xff] }
 0x1cc   : > { %v2345_v19 = vpop.permute.xlu0 %2344  ;;  %v2493_v5 = vmul.f32 %v4725_v30, %v2350_v27  ;;  %v1476_v27 = vadd.f32 %v4376_v24, %v964_v17  ;;  %v966_v62 = vmul.f32 %v4700_v57, %v5251_v46 }
 0x1cd   : > { %v2492_v7 = vmul.f32 %v4725_v30, %v2345_v19 }
 0x1ce   : > { %v2557_v8 = vadd.f32 %v2493_v5, %v2038_v37  ;;  %v1479_v37 = vadd.f32 %v4395_v61, %v965_v53  ;;  %v1484_v9 = vadd.f32 %v4369_v20, %v966_v62 }
 0x1cf   : > { %v2556_v41 = vadd.f32 %v2492_v7, %v2037_v11  ;;  %v2360_v14 = vpop.permute.xlu1 %2359  ;;  %v5250_v11 = vld [vmem:[#allocation32_spill] sm:$0xff] }
 0x1d0   : > { %v2628_v32 = vadd.f32 %v4738_v2, %v2557_v8  ;;  %v2495_v21 = vmul.f32 %v4725_v30, %v2360_v14  ;;  %v2355_v16 = vpop.permute.xlu0 %2354  ;;  %v967_v36 = vmul.f32 %v4700_v57, %v5250_v11 }
 0x1d1   : > { %v2627_v49 = vadd.f32 %v4738_v2, %v2556_v41  ;;  %v2494_v48 = vmul.f32 %v4725_v30, %v2355_v16 }
 0x1d2   : > { %v2692_v33 = vmax.f32 %v2628_v32, 0.0  ;;  %v2559_v35 = vadd.f32 %v2495_v21, %v2040_v34  ;;  %v1487_v8 = vadd.f32 %v4390_v56, %v967_v36 }
 0x1d3   : > { %v2691_v0 = vmax.f32 %v2627_v49, 0.0  ;;  %v2558_v54 = vadd.f32 %v2494_v48, %v2039_v51  ;;  %v1851_v13 = vpop.permute.xlu1 %1850 }
 0x1d4   : > { %v2630_v44 = vadd.f32 %v4738_v2, %v2559_v35  ;;  %v1846_v12 = vpop.permute.xlu0 %1845  ;;  %v1978_v6 = vmul.f32 %v4709_v23, %v1851_v13 }
 0x1d5   : > { %v2733_v45 = vpack.c.bf16 %v2692_v33, %v2691_v0  ;;  %v2629_v58 = vadd.f32 %v4738_v2, %v2558_v54  ;;  %v1977_v40 = vmul.f32 %v4709_v23, %v1846_v12 }
 0x1d6   : > { %v2694_v43 = vmax.f32 %v2630_v44, 0.0  ;;  %v2042_v5 = vadd.f32 %v1978_v6, %v1479_v37  ;;  %v5253_v6 = vld [vmem:[#allocation35_spill] sm:$0xff] }
 0x1d7   : > { %3613 = vmatprep.mubr.msk.bf16.mxu1 %vm1152_vm0, %v2733_v45  ;;  %v2693_v28 = vmax.f32 %v2629_v58, 0.0  ;;  %v1861_v50 = vpop.permute.xlu1 %1860  ;;  %v2041_v38 = vadd.f32 %v1977_v40, %v1476_v27  ;;  %v5254_v27 = vld [vmem:[#allocation36_spill] sm:$0xff] }
 0x1d8   : > { %v1856_v31 = vpop.permute.xlu0 %1855  ;;  %v1980_v7 = vmul.f32 %v4709_v23, %v1861_v50 }
 0x1d9   : > { %v2734_v29 = vpack.c.bf16 %v2694_v43, %v2693_v28  ;;  %v1979_v61 = vmul.f32 %v4709_v23, %v1856_v31  ;;  %v5252_v28 = vld [vmem:[#allocation34_spill] sm:$0xff]  ;;  %v968_v31 = vmul.f32 %v4700_v57, %v5253_v6 }
 0x1da   : > { %v2044_v34 = vadd.f32 %v1980_v7, %v1487_v8  ;;  %v969_v50 = vmul.f32 %v4700_v57, %v5252_v28 }
 0x1db   : > { %3614 = vmatmul.mubr.msk.bf16.gmra.mrb[44].mxu1 %vm1152_vm0, %v2734_v29  ;;  %v2370_v19 = vpop.permute.xlu1 %2369  ;;  %v2043_v16 = vadd.f32 %v1979_v61, %v1484_v9  ;;  %v1492_v40 = vadd.f32 %v4429_v25, %v968_v31  ;;  %v5258_v31 = vld [vmem:[#allocation41_spill] sm:$0xff] }
 0x1dc   : > { %v2497_v18 = vmul.f32 %v4725_v30, %v2370_v19  ;;  %v2365_v39 = vpop.permute.xlu0 %2364  ;;  %v1495_v29 = vadd.f32 %v4439_v63, %v969_v50  ;;  %v971_v19 = vmul.f32 %v4700_v57, %v5254_v27  ;;  %v5259_v27 = vld [vmem:[#allocation42_spill] sm:$0xff] }
 0x1dd   : > { %v2496_v24 = vmul.f32 %v4725_v30, %v2365_v39 }
 0x1de   : > { %v2561_v41 = vadd.f32 %v2497_v18, %v2042_v5  ;;  %v5255_v18 = vld [vmem:[#allocation37_spill] sm:$0xff]  ;;  %v1503_v62 = vadd.f32 %v4435_v1, %v971_v19  ;;  %v974_v19 = vmul.f32 %v4700_v57, %v5259_v27 }
 0x1df   : > { %v2560_v55 = vadd.f32 %v2496_v24, %v2041_v38  ;;  %v2380_v14 = vpop.permute.xlu1 %2379  ;;  %v970_v39 = vmul.f32 %v4700_v57, %v5255_v18 }
 0x1e0   : > { %v2632_v32 = vadd.f32 %v4738_v2, %v2561_v41  ;;  %v2499_v49 = vmul.f32 %v4725_v30, %v2380_v14  ;;  %v2375_v21 = vpop.permute.xlu0 %2374 }
 0x1e1   : > { %v2631_v51 = vadd.f32 %v4738_v2, %v2560_v55  ;;  %v2498_v48 = vmul.f32 %v4725_v30, %v2375_v21  ;;  %v1500_v61 = vadd.f32 %v4414_v3, %v970_v39 }
 0x1e2   : > { %v2696_v33 = vmax.f32 %v2632_v32, 0.0  ;;  %v2563_v0 = vadd.f32 %v2499_v49, %v2044_v34 }
 0x1e3   : > { %v2695_v35 = vmax.f32 %v2631_v51, 0.0  ;;  %v2562_v56 = vadd.f32 %v2498_v48, %v2043_v16  ;;  %v1871_v54 = vpop.permute.xlu1 %1870 }
 0x1e4   : > { %v2634_v20 = vadd.f32 %v4738_v2, %v2563_v0  ;;  %v1866_v13 = vpop.permute.xlu0 %1865  ;;  %v1982_v15 = vmul.f32 %v4709_v23, %v1871_v54 }
 0x1e5   : > { %v2735_v45 = vpack.c.bf16 %v2696_v33, %v2695_v35  ;;  %v2633_v44 = vadd.f32 %v4738_v2, %v2562_v56  ;;  %v1981_v17 = vmul.f32 %v4709_v23, %v1866_v13  ;;  %v5256_v13 = vld [vmem:[#allocation38_spill] sm:$0xff] }
 0x1e6   : > { %v2698_v12 = vmax.f32 %v2634_v20, 0.0  ;;  %v2046_v11 = vadd.f32 %v1982_v15, %v1495_v29 }
 0x1e7   : > { %v2697_v58 = vmax.f32 %v2633_v44, 0.0  ;;  %3617 = vmatprep.mubr.msk.bf16.mxu1 %vm1152_vm0, %v2735_v45  ;;  %v1881_v43 = vpop.permute.xlu1 %1880  ;;  %v2045_v46 = vadd.f32 %v1981_v17, %v1492_v40  ;;  %v973_v45 = vmul.f32 %v4700_v57, %v5256_v13 }
 0x1e8   : > { %v1876_v53 = vpop.permute.xlu0 %1875  ;;  %v1984_v36 = vmul.f32 %v4709_v23, %v1881_v43 }
 0x1e9   : > { %v2736_v59 = vpack.c.bf16 %v2698_v12, %v2697_v58  ;;  %v1983_v63 = vmul.f32 %v4709_v23, %v1876_v53  ;;  %v5257_v58 = vld [vmem:[#allocation39_spill] sm:$0xff]  ;;  %v1511_v15 = vadd.f32 %v4485_v52, %v973_v45  ;;  %v5262_v45 = vld [vmem:[#allocation49_spill] sm:$0xff] }
 0x1ea   : > { %v2048_v41 = vadd.f32 %v1984_v36, %v1503_v62  ;;  %v972_v43 = vmul.f32 %v4700_v57, %v5257_v58 }
 0x1eb   : > { %3618 = vmatmul.mubr.msk.bf16.gmra.mrb[48].mxu1 %vm1152_vm0, %v2736_v59  ;;  %v2390_v37 = vpop.permute.xlu1 %2389  ;;  %v2047_v34 = vadd.f32 %v1983_v63, %v1500_v61  ;;  %v975_v59 = vmul.f32 %v4700_v57, %v5258_v31 }
 0x1ec   : > { %v2501_v5 = vmul.f32 %v4725_v30, %v2390_v37  ;;  %v2385_v7 = vpop.permute.xlu0 %2384  ;;  %v1508_v53 = vadd.f32 %v4468_v47, %v972_v43 }
 0x1ed   : > { %v2500_v25 = vmul.f32 %v4725_v30, %v2385_v7  ;;  %v1519_v36 = vadd.f32 %v4479_v60, %v975_v59  ;;  %v1516_v7 = vadd.f32 %v4459_v42, %v974_v19 }
 0x1ee   : > { %v2565_v38 = vadd.f32 %v2501_v5, %v2046_v11 }
 0x1ef   : > { %v2564_v24 = vadd.f32 %v2500_v25, %v2045_v46  ;;  %v2400_v8 = vpop.permute.xlu1 %2399 }
 0x1f0   : > { %v2636_v9 = vadd.f32 %v4738_v2, %v2565_v38  ;;  %v2503_v55 = vmul.f32 %v4725_v30, %v2400_v8  ;;  %v2395_v14 = vpop.permute.xlu0 %2394 }
 0x1f1   : > { %v2635_v32 = vadd.f32 %v4738_v2, %v2564_v24  ;;  %v2502_v49 = vmul.f32 %v4725_v30, %v2395_v14 }
 0x1f2   : > { %v2700_v21 = vmax.f32 %v2636_v9, 0.0  ;;  %v2567_v16 = vadd.f32 %v2503_v55, %v2048_v41 }
 0x1f3   : > { %v2699_v51 = vmax.f32 %v2635_v32, 0.0  ;;  %v2566_v1 = vadd.f32 %v2502_v49, %v2047_v34  ;;  %v1891_v48 = vpop.permute.xlu1 %1890 }
 0x1f4   : > { %v2638_v3 = vadd.f32 %v4738_v2, %v2567_v16  ;;  %v1886_v33 = vpop.permute.xlu0 %1885  ;;  %v1986_v44 = vmul.f32 %v4709_v23, %v1891_v48 }
 0x1f5   : > { %v2737_v0 = vpack.c.bf16 %v2700_v21, %v2699_v51  ;;  %v2637_v35 = vadd.f32 %v4738_v2, %v2566_v1  ;;  %v1985_v50 = vmul.f32 %v4709_v23, %v1886_v33  ;;  %v5260_v51 = vld [vmem:[#allocation44_spill] sm:$0xff]  ;;  %v5261_v33 = vld [vmem:[#allocation45_spill] sm:$0xff] }
 0x1f6   : > { %v2702_v56 = vmax.f32 %v2638_v3, 0.0  ;;  %v2050_v17 = vadd.f32 %v1986_v44, %v1511_v15  ;;  %v977_v1 = vmul.f32 %v4700_v57, %v5260_v51  ;;  %v979_v44 = vmul.f32 %v4700_v57, %v5262_v45 }
 0x1f7   : > { %v2701_v54 = vmax.f32 %v2637_v35, 0.0  ;;  %3621 = vmatprep.mubr.msk.bf16.mxu1 %vm1152_vm0, %v2737_v0  ;;  %v1901_v20 = vpop.permute.xlu1 %1900  ;;  %v2049_v11 = vadd.f32 %v1985_v50, %v1508_v53  ;;  %v976_v0 = vmul.f32 %v4700_v57, %v5261_v33  ;;  %v5263_v50 = vld [vmem:[#allocation50_spill] sm:$0xff] }
 0x1f8   : > { %v1896_v12 = vpop.permute.xlu0 %1895  ;;  %v1988_v29 = vmul.f32 %v4709_v23, %v1901_v20  ;;  %v978_v15 = vmul.f32 %v4700_v57, %v5263_v50 }
 0x1f9   : > { %v2738_v28 = vpack.c.bf16 %v2702_v56, %v2701_v54  ;;  %v1987_v52 = vmul.f32 %v4709_v23, %v1896_v12  ;;  %v1527_v54 = vadd.f32 %v4524_v4, %v977_v1  ;;  %v1524_v20 = vadd.f32 %v4513_v22, %v976_v0 }
 0x1fa   : > { %v2052_v46 = vadd.f32 %v1988_v29, %v1519_v36  ;;  %v1532_v59 = vadd.f32 %v4501_v26, %v978_v15 }
 0x1fb   : > { %3622 = vmatmul.mubr.msk.bf16.gmra.mrb[52].mxu1 %vm1152_vm0, %v2738_v28  ;;  %v2410_v6 = vpop.permute.xlu1 %2409  ;;  %v2051_v38 = vadd.f32 %v1987_v52, %v1516_v7 }
 0x1fc   : > { %v2505_v40 = vmul.f32 %v4725_v30, %v2410_v6  ;;  %v2405_v37 = vpop.permute.xlu0 %2404  ;;  %v1535_v6 = vadd.f32 %v4520_v10, %v979_v44 }
 0x1fd   : > { %v2504_v47 = vmul.f32 %v4725_v30, %v2405_v37 }
 0x1fe   : > { %v2569_v5 = vadd.f32 %v2505_v40, %v2050_v17 }
 0x1ff   : > { %v2568_v18 = vadd.f32 %v2504_v47, %v2049_v11  ;;  %v2420_v39 = vpop.permute.xlu1 %2419 }
 0x200   : > { %v2640_v63 = vadd.f32 %v4738_v2, %v2569_v5  ;;  %v2507_v25 = vmul.f32 %v4725_v30, %v2420_v39  ;;  %v2415_v62 = vpop.permute.xlu0 %2414 }
 0x201   : > { %v2639_v61 = vadd.f32 %v4738_v2, %v2568_v18  ;;  %v2506_v24 = vmul.f32 %v4725_v30, %v2415_v62 }
 0x202   : > { %v2704_v8 = vmax.f32 %v2640_v63, 0.0  ;;  %v2571_v41 = vadd.f32 %v2507_v25, %v2052_v46 }
 0x203   : > { %v2703_v9 = vmax.f32 %v2639_v61, 0.0  ;;  %v2570_v60 = vadd.f32 %v2506_v24, %v2051_v38  ;;  %v1911_v55 = vpop.permute.xlu1 %1910 }
 0x204   : > { %v2642_v42 = vadd.f32 %v4738_v2, %v2571_v41  ;;  %v1906_v14 = vpop.permute.xlu0 %1905  ;;  %v1990_v48 = vmul.f32 %v4709_v23, %v1911_v55 }
 0x205   : > { %v2739_v34 = vpack.c.bf16 %v2704_v8, %v2703_v9  ;;  %v2641_v32 = vadd.f32 %v4738_v2, %v2570_v60  ;;  %v1989_v56 = vmul.f32 %v4709_v23, %v1906_v14 }
 0x206   : > { %v2706_v49 = vmax.f32 %v2642_v42, 0.0  ;;  %v2054_v12 = vadd.f32 %v1990_v48, %v1527_v54 }
 0x207   : > { %v2705_v21 = vmax.f32 %v2641_v32, 0.0  ;;  %3625 = vmatprep.mubr.msk.bf16.mxu1 %vm1152_vm0, %v2739_v34  ;;  %v1921_v16 = vpop.permute.xlu1 %1920  ;;  %v2053_v53 = vadd.f32 %v1989_v56, %v1524_v20 }
 0x208   : > { %v1916_v3 = vpop.permute.xlu0 %1915  ;;  %v1992_v58 = vmul.f32 %v4709_v23, %v1921_v16 }
 0x209   : > { %v2740_v35 = vpack.c.bf16 %v2706_v49, %v2705_v21  ;;  %v1991_v4 = vmul.f32 %v4709_v23, %v1916_v3 }
 0x20a   : > { %v2056_v40 = vadd.f32 %v1992_v58, %v1535_v6 }
 0x20b   : > { %3626 = vmatmul.mubr.msk.bf16.gmra.mrb[56].mxu1 %vm1152_vm0, %v2740_v35  ;;  %v2430_v13 = vpop.permute.xlu1 %2429  ;;  %v2055_v11 = vadd.f32 %v1991_v4, %v1532_v59 }
 0x20c   : > { %v2509_v43 = vmul.f32 %v4725_v30, %v2430_v13  ;;  %v2425_v28 = vpop.permute.xlu0 %2424 }
 0x20d   : > { %v2508_v22 = vmul.f32 %v4725_v30, %v2425_v28 }
 0x20e   : > { %v2573_v31 = vadd.f32 %v2509_v43, %v2054_v12 }
 0x20f   : > { %v2572_v17 = vadd.f32 %v2508_v22, %v2053_v53  ;;  %v2440_v29 = vpop.permute.xlu1 %2439 }
 0x210   : > { %v2644_v37 = vadd.f32 %v4738_v2, %v2573_v31  ;;  %v2511_v27 = vmul.f32 %v4725_v30, %v2440_v29  ;;  %v2435_v19 = vpop.permute.xlu0 %2434 }
 0x211   : > { %v2643_v57 = vadd.f32 %v4738_v2, %v2572_v17  ;;  %v2510_v23 = vmul.f32 %v4725_v30, %v2435_v19  ;;  %v4877_v30 = vld [vmem:[%s5090_s10] ss:$0 sm:$0xff] }
 0x212   : > { %v2708_v52 = vmax.f32 %v2644_v37, 0.0  ;;  %v2575_v47 = vadd.f32 %v2511_v27, %v2056_v40 }
 0x213   : > { %v2707_v10 = vmax.f32 %v2643_v57, 0.0  ;;  %v2574_v36 = vadd.f32 %v2510_v23, %v2055_v11 }
 0x214   : > { %v2646_v26 = vadd.f32 %v4738_v2, %v2575_v47 }
 0x215   : > { %v2741_v5 = vpack.c.bf16 %v2708_v52, %v2707_v10  ;;  %v2645_v7 = vadd.f32 %v4738_v2, %v2574_v36 }
 0x216   : > { %v2710_v18 = vmax.f32 %v2646_v26, 0.0 }
 0x217   : > { %v2709_v39 = vmax.f32 %v2645_v7, 0.0  ;;  %3629 = vmatprep.mubr.msk.bf16.mxu1 %vm1152_vm0, %v2741_v5 }
 0x219   : > { %v2742_v46 = vpack.c.bf16 %v2710_v18, %v2709_v39 }
 0x21b   : > { %3630 = vmatmul.mubr.msk.bf16.gmra.mrb[60].mxu1 %vm1152_vm0, %v2742_v46 }
 0x22a   : > { %v3571_v2 = vpop.f32.mrb[0].mxu1 }
 0x22b   : > { %v2905_v63 = vadd.f32 %v3571_v2, %v4877_v30  ;;  %v2896_v25 = vpop.f32.mrb[1].mxu1 }
 0x22c   : > { %v2897_v62 = vadd.f32 %v4877_v30, %v2896_v25  ;;  %v3572_v38 = vpop.f32.mrb[2].mxu1 }
 0x22d   : > { %3153 = vst.msk [vmem:[%s4883_s28 + $0x10] sm:$0xff] %vm1152_vm0, %v2905_v63  ;;  %v2908_v61 = vadd.f32 %v3572_v38, %v4877_v30  ;;  %v2899_v24 = vpop.f32.mrb[3].mxu1 }
 0x22e   : > { %3151 = vst.msk [vmem:[%s4883_s28] sm:$0xff] %vm1152_vm0, %v2897_v62  ;;  %v2900_v8 = vadd.f32 %v4877_v30, %v2899_v24 }
 0x22f   : > { %3154 = vst.msk [vmem:[%s4883_s28 + $0x18] sm:$0xff] %vm1152_vm0, %v2908_v61 }
 0x230   : > { %3152 = vst.msk [vmem:[%s4883_s28 + $0x8] sm:$0xff] %vm1152_vm0, %v2900_v8 }
 0x232   : > { %v3575_v41 = vpop.f32.mrb[4].mxu1 }
 0x233   : > { %v2921_v9 = vadd.f32 %v3575_v41, %v4877_v30  ;;  %v2912_v60 = vpop.f32.mrb[5].mxu1 }
 0x234   : > { %v2913_v55 = vadd.f32 %v4877_v30, %v2912_v60  ;;  %v3576_v42 = vpop.f32.mrb[6].mxu1 }
 0x235   : > { %3157 = vst.msk [vmem:[%s4883_s28 + $0x30] sm:$0xff] %vm1152_vm0, %v2921_v9  ;;  %v2924_v14 = vadd.f32 %v3576_v42, %v4877_v30  ;;  %v2915_v34 = vpop.f32.mrb[7].mxu1 }
 0x236   : > { %3155 = vst.msk [vmem:[%s4883_s28 + $0x20] sm:$0xff] %vm1152_vm0, %v2913_v55  ;;  %v2916_v32 = vadd.f32 %v4877_v30, %v2915_v34 }
 0x237   : > { %3158 = vst.msk [vmem:[%s4883_s28 + $0x38] sm:$0xff] %vm1152_vm0, %v2924_v14 }
 0x238   : > { %3156 = vst.msk [vmem:[%s4883_s28 + $0x28] sm:$0xff] %vm1152_vm0, %v2916_v32 }
 0x23a   : > { %v3579_v49 = vpop.f32.mrb[8].mxu1 }
 0x23b   : > { %v2937_v21 = vadd.f32 %v3579_v49, %v4877_v30  ;;  %v2928_v16 = vpop.f32.mrb[9].mxu1 }
 0x23c   : > { %v2929_v51 = vadd.f32 %v4877_v30, %v2928_v16  ;;  %v3580_v1 = vpop.f32.mrb[10].mxu1 }
 0x23d   : > { %3161 = vst.msk [vmem:[%s4883_s28 + $0x50] sm:$0xff] %vm1152_vm0, %v2937_v21  ;;  %v2940_v48 = vadd.f32 %v3580_v1, %v4877_v30  ;;  %v2931_v3 = vpop.f32.mrb[11].mxu1 }
 0x23e   : > { %3159 = vst.msk [vmem:[%s4883_s28 + $0x40] sm:$0xff] %vm1152_vm0, %v2929_v51  ;;  %v2932_v33 = vadd.f32 %v4877_v30, %v2931_v3 }
 0x23f   : > { %3162 = vst.msk [vmem:[%s4883_s28 + $0x58] sm:$0xff] %vm1152_vm0, %v2940_v48 }
 0x240   : > { %3160 = vst.msk [vmem:[%s4883_s28 + $0x48] sm:$0xff] %vm1152_vm0, %v2932_v33 }
 0x242   : > { %v3583_v0 = vpop.f32.mrb[12].mxu1 }
 0x243   : > { %v2953_v35 = vadd.f32 %v3583_v0, %v4877_v30  ;;  %v2944_v56 = vpop.f32.mrb[13].mxu1 }
 0x244   : > { %v2945_v54 = vadd.f32 %v4877_v30, %v2944_v56  ;;  %v3584_v20 = vpop.f32.mrb[14].mxu1 }
 0x245   : > { %3165 = vst.msk [vmem:[%s4883_s28 + $0x70] sm:$0xff] %vm1152_vm0, %v2953_v35  ;;  %v2956_v13 = vadd.f32 %v3584_v20, %v4877_v30  ;;  %v2947_v45 = vpop.f32.mrb[15].mxu1 }
 0x246   : > { %3163 = vst.msk [vmem:[%s4883_s28 + $0x60] sm:$0xff] %vm1152_vm0, %v2945_v54  ;;  %v2948_v44 = vadd.f32 %v4877_v30, %v2947_v45 }
 0x247   : > { %3166 = vst.msk [vmem:[%s4883_s28 + $0x78] sm:$0xff] %vm1152_vm0, %v2956_v13 }
 0x248   : > { %3164 = vst.msk [vmem:[%s4883_s28 + $0x68] sm:$0xff] %vm1152_vm0, %v2948_v44 }
 0x24a   : > { %v3587_v12 = vpop.f32.mrb[16].mxu1 }
 0x24b   : > { %v2969_v58 = vadd.f32 %v3587_v12, %v4877_v30  ;;  %v2960_v43 = vpop.f32.mrb[17].mxu1 }
 0x24c   : > { %v2961_v28 = vadd.f32 %v4877_v30, %v2960_v43  ;;  %v3588_v50 = vpop.f32.mrb[18].mxu1 }
 0x24d   : > { %3169 = vst.msk [vmem:[%s4883_s28 + $0x90] sm:$0xff] %vm1152_vm0, %v2969_v58  ;;  %v2972_v15 = vadd.f32 %v3588_v50, %v4877_v30  ;;  %v2963_v53 = vpop.f32.mrb[19].mxu1 }
 0x24e   : > { %3167 = vst.msk [vmem:[%s4883_s28 + $0x80] sm:$0xff] %vm1152_vm0, %v2961_v28  ;;  %v2964_v4 = vadd.f32 %v4877_v30, %v2963_v53 }
 0x24f   : > { %3170 = vst.msk [vmem:[%s4883_s28 + $0x98] sm:$0xff] %vm1152_vm0, %v2972_v15 }
 0x250   : > { %3168 = vst.msk [vmem:[%s4883_s28 + $0x88] sm:$0xff] %vm1152_vm0, %v2964_v4 }
 0x252   : > { %v3591_v22 = vpop.f32.mrb[20].mxu1 }
 0x253   : > { %v2985_v6 = vadd.f32 %v3591_v22, %v4877_v30  ;;  %v2976_v31 = vpop.f32.mrb[21].mxu1 }
 0x254   : > { %v2977_v59 = vadd.f32 %v4877_v30, %v2976_v31  ;;  %v3592_v17 = vpop.f32.mrb[22].mxu1 }
 0x255   : > { %3173 = vst.msk [vmem:[%s4883_s28 + $0xb0] sm:$0xff] %vm1152_vm0, %v2985_v6  ;;  %v2988_v29 = vadd.f32 %v3592_v17, %v4877_v30  ;;  %v2979_v40 = vpop.f32.mrb[23].mxu1 }
 0x256   : > { %3171 = vst.msk [vmem:[%s4883_s28 + $0xa0] sm:$0xff] %vm1152_vm0, %v2977_v59  ;;  %v2980_v37 = vadd.f32 %v4877_v30, %v2979_v40 }
 0x257   : > { %3174 = vst.msk [vmem:[%s4883_s28 + $0xb8] sm:$0xff] %vm1152_vm0, %v2988_v29 }
 0x258   : > { %3172 = vst.msk [vmem:[%s4883_s28 + $0xa8] sm:$0xff] %vm1152_vm0, %v2980_v37 }
 0x25e   : > { %v3595_v27 = vpop.f32.mrb[24].mxu1 }
 0x25f   : > { %v3001_v19 = vadd.f32 %v3595_v27, %v4877_v30  ;;  %v2992_v11 = vpop.f32.mrb[25].mxu1 }
 0x260   : > { %v2993_v57 = vadd.f32 %v4877_v30, %v2992_v11  ;;  %v3596_v23 = vpop.f32.mrb[26].mxu1 }
 0x261   : > { %3177 = vst.msk [vmem:[%s4883_s28 + $0xd0] sm:$0xff] %vm1152_vm0, %v3001_v19  ;;  %v3004_v52 = vadd.f32 %v3596_v23, %v4877_v30  ;;  %v2995_v47 = vpop.f32.mrb[27].mxu1 }
 0x262   : > { %3175 = vst.msk [vmem:[%s4883_s28 + $0xc0] sm:$0xff] %vm1152_vm0, %v2993_v57  ;;  %v2996_v10 = vadd.f32 %v4877_v30, %v2995_v47 }
 0x263   : > { %3178 = vst.msk [vmem:[%s4883_s28 + $0xd8] sm:$0xff] %vm1152_vm0, %v3004_v52 }
 0x264   : > { %3176 = vst.msk [vmem:[%s4883_s28 + $0xc8] sm:$0xff] %vm1152_vm0, %v2996_v10 }
 0x26e   : > { %v3599_v36 = vpop.f32.mrb[28].mxu1 }
 0x26f   : > { %v3017_v26 = vadd.f32 %v3599_v36, %v4877_v30  ;;  %v3008_v5 = vpop.f32.mrb[29].mxu1 }
 0x270   : > { %v3009_v7 = vadd.f32 %v4877_v30, %v3008_v5  ;;  %v3600_v18 = vpop.f32.mrb[30].mxu1 }
 0x271   : > { %3181 = vst.msk [vmem:[%s4883_s28 + $0xf0] sm:$0xff] %vm1152_vm0, %v3017_v26  ;;  %v3020_v39 = vadd.f32 %v3600_v18, %v4877_v30  ;;  %v3011_v46 = vpop.f32.mrb[31].mxu1 }
 0x272   : > { %3179 = vst.msk [vmem:[%s4883_s28 + $0xe0] sm:$0xff] %vm1152_vm0, %v3009_v7  ;;  %v3012_v2 = vadd.f32 %v4877_v30, %v3011_v46 }
 0x273   : > { %3182 = vst.msk [vmem:[%s4883_s28 + $0xf8] sm:$0xff] %vm1152_vm0, %v3020_v39 }
 0x274   : > { %3180 = vst.msk [vmem:[%s4883_s28 + $0xe8] sm:$0xff] %vm1152_vm0, %v3012_v2 }
 0x27e   : > { %v3603_v63 = vpop.f32.mrb[32].mxu1 }
 0x27f   : > { %v3033_v25 = vadd.f32 %v3603_v63, %v4877_v30  ;;  %v3024_v62 = vpop.f32.mrb[33].mxu1 }
 0x280   : > { %v3025_v38 = vadd.f32 %v4877_v30, %v3024_v62  ;;  %v3604_v61 = vpop.f32.mrb[34].mxu1 }
 0x281   : > { %3185 = vst.msk [vmem:[%s4883_s28 + $0x110] sm:$0xff] %vm1152_vm0, %v3033_v25  ;;  %v3036_v24 = vadd.f32 %v3604_v61, %v4877_v30  ;;  %v3027_v8 = vpop.f32.mrb[35].mxu1 }
 0x282   : > { %3183 = vst.msk [vmem:[%s4883_s28 + $0x100] sm:$0xff] %vm1152_vm0, %v3025_v38  ;;  %v3028_v41 = vadd.f32 %v4877_v30, %v3027_v8 }
 0x283   : > { %3186 = vst.msk [vmem:[%s4883_s28 + $0x118] sm:$0xff] %vm1152_vm0, %v3036_v24 }
 0x284   : > { %3184 = vst.msk [vmem:[%s4883_s28 + $0x108] sm:$0xff] %vm1152_vm0, %v3028_v41 }
 0x28e   : > { %v3607_v9 = vpop.f32.mrb[36].mxu1 }
 0x28f   : > { %v3049_v60 = vadd.f32 %v3607_v9, %v4877_v30  ;;  %v3040_v55 = vpop.f32.mrb[37].mxu1 }
 0x290   : > { %v3041_v42 = vadd.f32 %v4877_v30, %v3040_v55  ;;  %v3608_v14 = vpop.f32.mrb[38].mxu1 }
 0x291   : > { %3189 = vst.msk [vmem:[%s4883_s28 + $0x130] sm:$0xff] %vm1152_vm0, %v3049_v60  ;;  %v3052_v34 = vadd.f32 %v3608_v14, %v4877_v30  ;;  %v3043_v32 = vpop.f32.mrb[39].mxu1 }
 0x292   : > { %3187 = vst.msk [vmem:[%s4883_s28 + $0x120] sm:$0xff] %vm1152_vm0, %v3041_v42  ;;  %v3044_v49 = vadd.f32 %v4877_v30, %v3043_v32 }
 0x293   : > { %3190 = vst.msk [vmem:[%s4883_s28 + $0x138] sm:$0xff] %vm1152_vm0, %v3052_v34 }
 0x294   : > { %3188 = vst.msk [vmem:[%s4883_s28 + $0x128] sm:$0xff] %vm1152_vm0, %v3044_v49 }
 0x29e   : > { %v3611_v21 = vpop.f32.mrb[40].mxu1 }
 0x29f   : > { %v3065_v16 = vadd.f32 %v3611_v21, %v4877_v30  ;;  %v3056_v51 = vpop.f32.mrb[41].mxu1 }
 0x2a0   : > { %v3057_v1 = vadd.f32 %v4877_v30, %v3056_v51  ;;  %v3612_v48 = vpop.f32.mrb[42].mxu1 }
 0x2a1   : > { %3193 = vst.msk [vmem:[%s4883_s28 + $0x150] sm:$0xff] %vm1152_vm0, %v3065_v16  ;;  %v3068_v3 = vadd.f32 %v3612_v48, %v4877_v30  ;;  %v3059_v33 = vpop.f32.mrb[43].mxu1 }
 0x2a2   : > { %3191 = vst.msk [vmem:[%s4883_s28 + $0x140] sm:$0xff] %vm1152_vm0, %v3057_v1  ;;  %v3060_v0 = vadd.f32 %v4877_v30, %v3059_v33 }
 0x2a3   : > { %3194 = vst.msk [vmem:[%s4883_s28 + $0x158] sm:$0xff] %vm1152_vm0, %v3068_v3 }
 0x2a4   : > { %3192 = vst.msk [vmem:[%s4883_s28 + $0x148] sm:$0xff] %vm1152_vm0, %v3060_v0 }
 0x2ae   : > { %v3615_v35 = vpop.f32.mrb[44].mxu1 }
 0x2af   : > { %v3081_v56 = vadd.f32 %v3615_v35, %v4877_v30  ;;  %v3072_v54 = vpop.f32.mrb[45].mxu1 }
 0x2b0   : > { %v3073_v20 = vadd.f32 %v4877_v30, %v3072_v54  ;;  %v3616_v13 = vpop.f32.mrb[46].mxu1 }
 0x2b1   : > { %3197 = vst.msk [vmem:[%s4883_s28 + $0x170] sm:$0xff] %vm1152_vm0, %v3081_v56  ;;  %v3084_v45 = vadd.f32 %v3616_v13, %v4877_v30  ;;  %v3075_v44 = vpop.f32.mrb[47].mxu1 }
 0x2b2   : > { %3195 = vst.msk [vmem:[%s4883_s28 + $0x160] sm:$0xff] %vm1152_vm0, %v3073_v20  ;;  %v3076_v12 = vadd.f32 %v4877_v30, %v3075_v44 }
 0x2b3   : > { %3198 = vst.msk [vmem:[%s4883_s28 + $0x178] sm:$0xff] %vm1152_vm0, %v3084_v45 }
 0x2b4   : > { %3196 = vst.msk [vmem:[%s4883_s28 + $0x168] sm:$0xff] %vm1152_vm0, %v3076_v12 }
 0x2be   : > { %v3619_v58 = vpop.f32.mrb[48].mxu1 }
 0x2bf   : > { %v3097_v43 = vadd.f32 %v3619_v58, %v4877_v30  ;;  %v3088_v28 = vpop.f32.mrb[49].mxu1 }
 0x2c0   : > { %v3089_v50 = vadd.f32 %v4877_v30, %v3088_v28  ;;  %v3620_v15 = vpop.f32.mrb[50].mxu1 }
 0x2c1   : > { %3201 = vst.msk [vmem:[%s4883_s28 + $0x190] sm:$0xff] %vm1152_vm0, %v3097_v43  ;;  %v3100_v53 = vadd.f32 %v3620_v15, %v4877_v30  ;;  %v3091_v4 = vpop.f32.mrb[51].mxu1 }
 0x2c2   : > { %3199 = vst.msk [vmem:[%s4883_s28 + $0x180] sm:$0xff] %vm1152_vm0, %v3089_v50  ;;  %v3092_v22 = vadd.f32 %v4877_v30, %v3091_v4 }
 0x2c3   : > { %3202 = vst.msk [vmem:[%s4883_s28 + $0x198] sm:$0xff] %vm1152_vm0, %v3100_v53 }
 0x2c4   : > { %3200 = vst.msk [vmem:[%s4883_s28 + $0x188] sm:$0xff] %vm1152_vm0, %v3092_v22 }
 0x2ce   : > { %v3623_v6 = vpop.f32.mrb[52].mxu1 }
 0x2cf   : > { %v3113_v31 = vadd.f32 %v3623_v6, %v4877_v30  ;;  %v3104_v59 = vpop.f32.mrb[53].mxu1 }
 0x2d0   : > { %v3105_v17 = vadd.f32 %v4877_v30, %v3104_v59  ;;  %v3624_v29 = vpop.f32.mrb[54].mxu1 }
 0x2d1   : > { %3205 = vst.msk [vmem:[%s4883_s28 + $0x1b0] sm:$0xff] %vm1152_vm0, %v3113_v31  ;;  %v3116_v40 = vadd.f32 %v3624_v29, %v4877_v30  ;;  %v3107_v37 = vpop.f32.mrb[55].mxu1 }
 0x2d2   : > { %3203 = vst.msk [vmem:[%s4883_s28 + $0x1a0] sm:$0xff] %vm1152_vm0, %v3105_v17  ;;  %v3108_v27 = vadd.f32 %v4877_v30, %v3107_v37 }
 0x2d3   : > { %3206 = vst.msk [vmem:[%s4883_s28 + $0x1b8] sm:$0xff] %vm1152_vm0, %v3116_v40 }
 0x2d4   : > { %3204 = vst.msk [vmem:[%s4883_s28 + $0x1a8] sm:$0xff] %vm1152_vm0, %v3108_v27 }
 0x2de   : > { %v3627_v19 = vpop.f32.mrb[56].mxu1 }
 0x2df   : > { %v3129_v11 = vadd.f32 %v3627_v19, %v4877_v30  ;;  %v3120_v57 = vpop.f32.mrb[57].mxu1 }
 0x2e0   : > { %v3121_v23 = vadd.f32 %v4877_v30, %v3120_v57  ;;  %v3628_v52 = vpop.f32.mrb[58].mxu1 }
 0x2e1   : > { %3209 = vst.msk [vmem:[%s4883_s28 + $0x1d0] sm:$0xff] %vm1152_vm0, %v3129_v11  ;;  %v3132_v47 = vadd.f32 %v3628_v52, %v4877_v30  ;;  %v3123_v10 = vpop.f32.mrb[59].mxu1 }
 0x2e2   : > { %3207 = vst.msk [vmem:[%s4883_s28 + $0x1c0] sm:$0xff] %vm1152_vm0, %v3121_v23  ;;  %v3124_v36 = vadd.f32 %v4877_v30, %v3123_v10 }
 0x2e3   : > { %3210 = vst.msk [vmem:[%s4883_s28 + $0x1d8] sm:$0xff] %vm1152_vm0, %v3132_v47 }
 0x2e4   : > { %3208 = vst.msk [vmem:[%s4883_s28 + $0x1c8] sm:$0xff] %vm1152_vm0, %v3124_v36 }
 0x2ee   : > { %v3631_v26 = vpop.f32.mrb[60].mxu1 }
 0x2ef   : > { %v3145_v5 = vadd.f32 %v3631_v26, %v4877_v30  ;;  %v3136_v7 = vpop.f32.mrb[61].mxu1 }
 0x2f0   : > { %v3137_v18 = vadd.f32 %v4877_v30, %v3136_v7  ;;  %v3632_v39 = vpop.f32.mrb[62].mxu1 }
 0x2f1   : > { %3213 = vst.msk [vmem:[%s4883_s28 + $0x1f0] sm:$0xff] %vm1152_vm0, %v3145_v5  ;;  %v3148_v46 = vadd.f32 %v3632_v39, %v4877_v30  ;;  %v3139_v2 = vpop.f32.mrb[63].mxu1 }
 0x2f2   : > { %3211 = vst.msk [vmem:[%s4883_s28 + $0x1e0] sm:$0xff] %vm1152_vm0, %v3137_v18  ;;  %v3140_v63 = vadd.f32 %v4877_v30, %v3139_v2 }
 0x2f3   : > { %3214 = vst.msk [vmem:[%s4883_s28 + $0x1f8] sm:$0xff] %vm1152_vm0, %v3148_v46 }
 0x2f4   : > { %3212 = vst.msk [vmem:[%s4883_s28 + $0x1e8] sm:$0xff] %vm1152_vm0, %v3140_v63 }
 0x2f5 PF: > { %s21_s17 = sadd.s32 1, %s3690_s17  }
 0x2f6   : > { %p18_p4 = scmp.ge.s32.totalorder %s21_s17, 4  }
 0x2f8   :  { %20 = sbr.rel (!%p18_p4) target bundleno = 1 (0x1), region = 103 }

</bundles_post_ra>
